<compile_context>
chip_gen: v5e
topology: v5e:2x2
jax: 0.10.0
libtpu: 0.0.40
codegen_flags: <defaults>
</compile_context>

<pallas_src>
import functools

import jax
import jax.numpy as jnp
from jax.experimental import pallas as pl
from jax.experimental.pallas import tpu as pltpu

LN_EPS = 1e-5
BN_EPS = 1e-5
SAM_K = 7
SAM_P = 3


# ----------------------------------------------------------------------------- kernels
def _conv_stack_kernel(colT_ref, rowi_ref, coli_ref, w1T_ref, b1_ref,
                       w2T_ref, b2_ref, y2_ref, ssum_ref, ssq_ref, *, H, W, K):
    """Fused conv1 + LayerNorm + ReLU + conv2 + per-sample BN partial stats.

    colT_ref: (1, K*K*Cin, HW) channel-major im2col patches of one sample
    rowi/coli: (1, HW) int32 pixel row / col indices (for border masks)
    w1T_ref : (C1, K*K*Cin)    b1_ref: (C1, 1)
    w2T_ref : (K*K, C2, C1)    b2_ref: (C2, 1)
    y2_ref  : (1, C2, HW)      ssum_ref/ssq_ref: (1, C2, 1)
    """
    HW = H * W
    # ---- conv1: one MXU matmul, channel-major: (C1, 9*Cin) @ (9*Cin, HW)
    y1 = jnp.dot(w1T_ref[...], colT_ref[0],
                 preferred_element_type=jnp.float32) + b1_ref[...]

    # ---- per-sample LayerNorm over all (C1, H, W) elements: one-pass stats
    n = y1.size
    s1 = jnp.sum(y1)
    s2 = jnp.sum(y1 * y1)
    mu = s1 / n
    var = jnp.maximum(s2 / n - mu * mu, 0.0)
    y1 = jnp.maximum((y1 - mu) * jax.lax.rsqrt(var + LN_EPS), 0.0)   # (C1, HW)

    # ---- conv2: 9 shifted-tap matmuls, kept entirely in VMEM.  The spatial
    #      shift of each tap is a pltpu.roll of the flattened pixel (lane) axis
    #      plus a border-validity mask -> no y1 / im2col HBM round trip.
    row = rowi_ref[...]
    col = coli_ref[...]
    C2 = b2_ref.shape[0]
    acc = jnp.zeros((C2, HW), jnp.float32)
    off = K // 2
    for kh in range(K):
        dh = kh - off
        rmask = jnp.logical_and(row + dh >= 0, row + dh < H)
        for kw in range(K):
            dw = kw - off
            m = jnp.logical_and(rmask,
                                jnp.logical_and(col + dw >= 0, col + dw < W))
            d = dh * W + dw
            shifted = pltpu.roll(y1, (-d) % HW, axis=1) if d else y1
            shifted = jnp.where(m, shifted, 0.0)                     # (C1, HW)
            acc = acc + jnp.dot(w2T_ref[kh * K + kw], shifted,
                                preferred_element_type=jnp.float32)
    y2 = acc + b2_ref[...]                                           # (C2, HW)
    y2_ref[0] = y2
    # per-sample partial BatchNorm statistics (combined across B in plain JAX)
    ssum_ref[0] = jnp.sum(y2, axis=1, keepdims=True)
    ssq_ref[0] = jnp.sum(y2 * y2, axis=1, keepdims=True)


def _cbam_kernel(y2_ref, mean_ref, istd_ref, rowi_ref, coli_ref, waT_ref,
                 baT_ref, wbT_ref, bbT_ref, wsam_ref, o_ref, *, H, W):
    """Fused per-sample: BatchNorm apply + ReLU -> CAM -> SAM -> gates + residual.

    y2_ref  : (1, C, HW) conv2 output (channel-major, pixels on lanes)
    mean_ref/istd_ref : (C, 1) batch-norm mean / inverse std
    waT (Cr, C), baT (Cr, 1), wbT (C, Cr), bbT (C, 1): CAM shared MLP (transposed)
    wsam_ref: SMEM (7*7*2,) flattened SAM conv weight
    o_ref   : (1, C, HW)
    """
    HW = H * W
    # BatchNorm (biased batch stats, gamma=1, beta=0) + ReLU — lane dense
    z = jnp.maximum((y2_ref[0] - mean_ref[...]) * istd_ref[...], 0.0)   # (C, HW)
    C = z.shape[0]

    # --- CAM: spatial max/avg pools stacked into one (C, 2) matrix so the
    #     shared 2-layer MLP runs a single time; sigmoid gate broadcast later.
    mx = jnp.max(z, axis=1, keepdims=True)                        # (C, 1)
    av = jnp.sum(z, axis=1, keepdims=True) * (1.0 / HW)           # (C, 1)
    colsel = jax.lax.broadcasted_iota(jnp.int32, (C, 2), 1)
    pooled = jnp.where(colsel == 0, mx, av)                       # (C, 2)
    h = jnp.maximum(jnp.dot(waT_ref[...], pooled,
                            preferred_element_type=jnp.float32) + baT_ref[...],
                    0.0)                                          # (Cr, 2)
    mo = jnp.dot(wbT_ref[...], h,
                 preferred_element_type=jnp.float32) + bbT_ref[...]    # (C, 2)
    gate = jax.nn.sigmoid(jnp.sum(mo, axis=1, keepdims=True))     # (C, 1)
    cam = gate * z                                                # (C, HW)

    # --- SAM maps: per-pixel channel max / mean -> lane-dense (1, HW) rows
    pmax = jnp.max(cam, axis=0, keepdims=True)
    pavg = jnp.sum(cam, axis=0, keepdims=True) * (1.0 / C)

    # 7x7 spatial conv (2 -> 1 channels, no bias): each tap is a lane roll of
    # the flattened pixel axis + a border mask; the 98 scalar weights live in
    # SMEM.  Rolls ride the XLU slot and co-issue with the VALU multiply-adds.
    row = rowi_ref[...]
    col = coli_ref[...]
    att = jnp.zeros((1, HW), jnp.float32)
    for kh in range(SAM_K):
        dh = kh - SAM_P
        rmask = jnp.logical_and(row + dh >= 0, row + dh < H)
        for kw in range(SAM_K):
            dw = kw - SAM_P
            m = jnp.logical_and(rmask,
                                jnp.logical_and(col + dw >= 0, col + dw < W))
            d = dh * W + dw
            sh = (-d) % HW
            smax = pltpu.roll(pmax, sh, axis=1) if d else pmax
            savg = pltpu.roll(pavg, sh, axis=1) if d else pavg
            tap = (wsam_ref[(kh * SAM_K + kw) * 2] * smax
                   + wsam_ref[(kh * SAM_K + kw) * 2 + 1] * savg)
            att = att + jnp.where(m, tap, 0.0)
    att = jax.nn.sigmoid(att)                                     # (1, HW)

    # spatial gate + residual — all lane-dense, unmasked stores
    o_ref[0] = att * cam + z


# ----------------------------------------------------------------------------- wrapper
def _im2col_chw(x_nchw, K, p):
    """(B, C, H, W) -> (B, K*K*C, H*W) im2col patches, rows ordered (kh, kw, c)."""
    B, C, H, W = x_nchw.shape
    xp = jnp.pad(x_nchw, ((0, 0), (0, 0), (p, p), (p, p)))
    taps = [xp[:, :, kh:kh + H, kw:kw + W] for kh in range(K) for kw in range(K)]
    return jnp.stack(taps, axis=1).reshape(B, K * K * C, H * W)


def cbam_encoder_forward(x_nchw, params, *, kernel_size=3, padding=1):
    B, Cin, H, W = x_nchw.shape
    K, p = kernel_size, padding
    assert H + 2 * p - K + 1 == H and W + 2 * p - K + 1 == W, "expects 'same' conv"
    HW = H * W
    w1, b1 = params["w1"], params["b1"]
    w2, b2 = params["w2"], params["b2"]
    wa, ba = params["wa"], params["ba"]
    wb, bb = params["wb"], params["bb"]
    wsam = params["wsam"]
    C1, C2, Cr = w1.shape[-1], w2.shape[-1], wa.shape[-1]

    # channel-major operands: the flattened pixel axis rides the TPU lane dim
    colT = _im2col_chw(x_nchw, K, p)                              # (B, K*K*Cin, HW)
    w1T = jnp.transpose(w1.reshape(K * K * Cin, C1))              # (C1, K*K*Cin)
    w2T = jnp.transpose(w2.reshape(K * K, C1, C2), (0, 2, 1))     # (K*K, C2, C1)
    pix = jnp.arange(HW, dtype=jnp.int32)
    rowi = (pix // W).reshape(1, HW)
    coli = (pix % W).reshape(1, HW)

    cparams = pltpu.CompilerParams(
        dimension_semantics=("parallel",),
        vmem_limit_bytes=32 * 1024 * 1024)

    # ---- stage A: conv1 + LayerNorm + ReLU + conv2 + BN partial stats (fused)
    # TODO(synk): at production H*W the per-sample blocks should get an extra
    #             pixel-tiling grid axis (two-pass LayerNorm) as a v7x 64 MiB
    #             VMEM guard; unnecessary at these shapes.
    kern_a = functools.partial(_conv_stack_kernel, H=H, W=W, K=K)
    y2, ssum, ssq = pl.pallas_call(
        kern_a,
        out_shape=(jax.ShapeDtypeStruct((B, C2, HW), jnp.float32),
                   jax.ShapeDtypeStruct((B, C2, 1), jnp.float32),
                   jax.ShapeDtypeStruct((B, C2, 1), jnp.float32)),
        grid=(B,),
        in_specs=[
            pl.BlockSpec((1, K * K * Cin, HW), lambda b: (b, 0, 0)),
            pl.BlockSpec((1, HW), lambda b: (0, 0)),
            pl.BlockSpec((1, HW), lambda b: (0, 0)),
            pl.BlockSpec((C1, K * K * Cin), lambda b: (0, 0)),
            pl.BlockSpec((C1, 1), lambda b: (0, 0)),
            pl.BlockSpec((K * K, C2, C1), lambda b: (0, 0, 0)),
            pl.BlockSpec((C2, 1), lambda b: (0, 0)),
        ],
        out_specs=(pl.BlockSpec((1, C2, HW), lambda b: (b, 0, 0)),
                   pl.BlockSpec((1, C2, 1), lambda b: (b, 0, 0)),
                   pl.BlockSpec((1, C2, 1), lambda b: (b, 0, 0))),
        compiler_params=cparams,
    )(colT, rowi, coli, w1T, b1.reshape(C1, 1), w2T, b2.reshape(C2, 1))

    # ---- BatchNorm batch statistics: tiny (B, C2) combine in plain JAX
    n = float(B * HW)
    bn_mean = jnp.sum(ssum, axis=0) / n                                    # (C2, 1)
    bn_var = jnp.maximum(jnp.sum(ssq, axis=0) / n - bn_mean * bn_mean, 0.0)
    bn_istd = jax.lax.rsqrt(bn_var + BN_EPS)                               # (C2, 1)

    # ---- stage B: fused BN apply + ReLU + CAM + SAM + residual, per sample
    kern_b = functools.partial(_cbam_kernel, H=H, W=W)
    out = pl.pallas_call(
        kern_b,
        out_shape=jax.ShapeDtypeStruct((B, C2, HW), jnp.float32),
        grid=(B,),
        in_specs=[
            pl.BlockSpec((1, C2, HW), lambda b: (b, 0, 0)),
            pl.BlockSpec((C2, 1), lambda b: (0, 0)),
            pl.BlockSpec((C2, 1), lambda b: (0, 0)),
            pl.BlockSpec((1, HW), lambda b: (0, 0)),
            pl.BlockSpec((1, HW), lambda b: (0, 0)),
            pl.BlockSpec((Cr, C2), lambda b: (0, 0)),
            pl.BlockSpec((Cr, 1), lambda b: (0, 0)),
            pl.BlockSpec((C2, Cr), lambda b: (0, 0)),
            pl.BlockSpec((C2, 1), lambda b: (0, 0)),
            pl.BlockSpec(memory_space=pltpu.MemorySpace.SMEM),
        ],
        out_specs=pl.BlockSpec((1, C2, HW), lambda b: (b, 0, 0)),
        compiler_params=cparams,
    )(y2, bn_mean, bn_istd, rowi, coli,
      jnp.transpose(wa), ba.reshape(Cr, 1), jnp.transpose(wb),
      bb.reshape(C2, 1), wsam.reshape(-1))

    return out.reshape(B, C2, H, W)                               # NCHW, like PyTorch


# ----------------------------------------------------------------------------- params & reference
def init_params(key, input_dim, hidden_dim, kernel_size):
    Cin = input_dim + hidden_dim
    C1, C2 = 2 * hidden_dim, 4 * hidden_dim
    r = 1                                   # CBAM(4*hidden_dim, r=1)
    Cr = C2 // r
    ks = jax.random.split(key, 9)
    sc = 0.1
    return {
        "w1": sc * jax.random.normal(ks[0], (kernel_size, kernel_size, Cin, C1), jnp.float32),
        "b1": sc * jax.random.normal(ks[1], (C1,), jnp.float32),
        "w2": sc * jax.random.normal(ks[2], (kernel_size, kernel_size, C1, C2), jnp.float32),
        "b2": sc * jax.random.normal(ks[3], (C2,), jnp.float32),
        "wa": sc * jax.random.normal(ks[4], (C2, Cr), jnp.float32),
        "ba": sc * jax.random.normal(ks[5], (Cr,), jnp.float32),
        "wb": sc * jax.random.normal(ks[6], (Cr, C2), jnp.float32),
        "bb": sc * jax.random.normal(ks[7], (C2,), jnp.float32),
        "wsam": sc * jax.random.normal(ks[8], (7, 7, 2), jnp.float32),
    }


def reference_forward(x_nchw, params, *, padding=1):
    """Pure-JAX reference of the same forward math (NCHW in / NCHW out)."""
    p = padding
    dn = ("NCHW", "HWIO", "NCHW")

    def conv(x, w, b, pad):
        y = jax.lax.conv_general_dilated(
            x, w, window_strides=(1, 1), padding=[(pad, pad), (pad, pad)],
            dimension_numbers=dn)
        return y if b is None else y + b.reshape(1, -1, 1, 1)

    y = conv(x_nchw, params["w1"], params["b1"], p)
    mean = jnp.mean(y, axis=(1, 2, 3), keepdims=True)
    var = jnp.mean((y - mean) ** 2, axis=(1, 2, 3), keepdims=True)
    y = jnp.maximum((y - mean) / jnp.sqrt(var + LN_EPS), 0.0)
    y = conv(y, params["w2"], params["b2"], p)
    m = jnp.mean(y, axis=(0, 2, 3), keepdims=True)
    v = jnp.mean((y - m) ** 2, axis=(0, 2, 3), keepdims=True)
    z = jnp.maximum((y - m) / jnp.sqrt(v + BN_EPS), 0.0)
    mx = jnp.max(z, axis=(2, 3))                                  # (B, C)
    av = jnp.mean(z, axis=(2, 3))

    def mlp(vv):
        h = jnp.maximum(vv @ params["wa"] + params["ba"], 0.0)
        return h @ params["wb"] + params["bb"]

    gate = jax.nn.sigmoid(mlp(mx) + mlp(av))
    cam = gate[:, :, None, None] * z
    maps = jnp.concatenate([jnp.max(cam, axis=1, keepdims=True),
                            jnp.mean(cam, axis=1, keepdims=True)], axis=1)
    att = conv(maps, params["wsam"][..., None], None, 3)
    return jax.nn.sigmoid(att) * cam + z


# ----------------------------------------------------------------------------- main
if __name__ == "__main__":
    B, H, W = 2, 16, 16
    input_dim, hidden_dim = 4, 8
    kernel_size, padding = 3, 1

    key = jax.random.PRNGKey(0)
    kx, kp = jax.random.split(key)
    # PyTorch-style NCHW input (the kernels use channel-major layout natively).
    x_nchw = jax.random.normal(kx, (B, input_dim + hidden_dim, H, W), jnp.float32)
    params = init_params(kp, input_dim, hidden_dim, kernel_size)

    out = cbam_encoder_forward(x_nchw, params,
                               kernel_size=kernel_size, padding=padding)
    out = jax.block_until_ready(out)

    assert out.shape == (B, 4 * hidden_dim, H, W)
    ref = reference_forward(x_nchw, params, padding=padding)
    err = float(jnp.max(jnp.abs(out - ref)))
    if err > 1e-3:
        raise AssertionError(f"mismatch vs pure-JAX reference: max abs err {err}")
    print("KERNEL_OK")
</pallas_src>

<mosaic_0001>
module attributes {stable_mosaic.version = 11 : i64} {
  func.func @_conv_stack_kernel(%arg0: i32, %arg1: memref<1x108x256xf32, #tpu.memory_space<vmem>>, %arg2: memref<1x256xi32, #tpu.memory_space<vmem>>, %arg3: memref<1x256xi32, #tpu.memory_space<vmem>>, %arg4: memref<16x108xf32, #tpu.memory_space<vmem>>, %arg5: memref<16x1xf32, #tpu.memory_space<vmem>>, %arg6: memref<9x32x16xf32, #tpu.memory_space<vmem>>, %arg7: memref<32x1xf32, #tpu.memory_space<vmem>>, %arg8: memref<1x32x256xf32, #tpu.memory_space<vmem>>, %arg9: memref<1x32x1xf32, #tpu.memory_space<vmem>>, %arg10: memref<1x32x1xf32, #tpu.memory_space<vmem>>) attributes {dimension_semantics = [#tpu.dimension_semantics<parallel>], iteration_bounds = array<i64: 2>, scalar_prefetch = 0 : i64, scratch_operands = 0 : i64, tpu.core_type = #tpu.core_type<tc>, window_params = [{transform_indices = @transform_0, window_bounds = array<i64: 1, 108, 256>}, {pipeline_mode = #tpu.pipeline_mode<synchronous>, transform_indices = @transform_1, window_bounds = array<i64: 1, 256>}, {pipeline_mode = #tpu.pipeline_mode<synchronous>, transform_indices = @transform_2, window_bounds = array<i64: 1, 256>}, {pipeline_mode = #tpu.pipeline_mode<synchronous>, transform_indices = @transform_3, window_bounds = array<i64: 16, 108>}, {pipeline_mode = #tpu.pipeline_mode<synchronous>, transform_indices = @transform_4, window_bounds = array<i64: 16, 1>}, {pipeline_mode = #tpu.pipeline_mode<synchronous>, transform_indices = @transform_5, window_bounds = array<i64: 9, 32, 16>}, {pipeline_mode = #tpu.pipeline_mode<synchronous>, transform_indices = @transform_6, window_bounds = array<i64: 32, 1>}, {transform_indices = @transform_7, window_bounds = array<i64: 1, 32, 256>}, {transform_indices = @transform_8, window_bounds = array<i64: 1, 32, 1>}, {transform_indices = @transform_9, window_bounds = array<i64: 1, 32, 1>}]} {
    %c0 = arith.constant 0 : index
    %c0_0 = arith.constant 0 : index
    %0 = vector.load %arg4[%c0, %c0_0] : memref<16x108xf32, #tpu.memory_space<vmem>>, vector<16x108xf32>
    %c0_1 = arith.constant 0 : index
    %c0_2 = arith.constant 0 : index
    %c0_3 = arith.constant 0 : index
    %1 = vector.load %arg1[%c0_1, %c0_2, %c0_3] : memref<1x108x256xf32, #tpu.memory_space<vmem>>, vector<1x108x256xf32>
    %2 = vector.shape_cast %1 : vector<1x108x256xf32> to vector<108x256xf32>
    %cst = arith.constant dense<0.000000e+00> : vector<16x256xf32>
    %3 = tpu.matmul %0, %2, %cst {dimension_numbers = #tpu.dot_dimension_numbers<[1], [0], [0], [1], [0, 0, 1, 1], [], []>} : vector<16x108xf32>, vector<108x256xf32>, vector<16x256xf32> -> vector<16x256xf32>
    %c0_4 = arith.constant 0 : index
    %c0_5 = arith.constant 0 : index
    %4 = vector.load %arg5[%c0_4, %c0_5] : memref<16x1xf32, #tpu.memory_space<vmem>>, vector<16x1xf32>
    %5 = vector.broadcast %4 : vector<16x1xf32> to vector<16x256xf32>
    %6 = arith.addf %3, %5 : vector<16x256xf32>
    %7 = vector.shape_cast %6 : vector<16x256xf32> to vector<1x16x256xf32>
    %cst_6 = arith.constant dense<0.000000e+00> : vector<1xf32>
    %8 = vector.multi_reduction <add>, %7, %cst_6 [1, 2] : vector<1x16x256xf32> to vector<1xf32>
    %9 = vector.shape_cast %8 : vector<1xf32> to vector<1x1x1xf32>
    %10 = vector.extract %9[0, 0, 0] : f32 from vector<1x1x1xf32>
    %11 = arith.mulf %6, %6 : vector<16x256xf32>
    %12 = vector.shape_cast %11 : vector<16x256xf32> to vector<1x16x256xf32>
    %cst_7 = arith.constant dense<0.000000e+00> : vector<1xf32>
    %13 = vector.multi_reduction <add>, %12, %cst_7 [1, 2] : vector<1x16x256xf32> to vector<1xf32>
    %14 = vector.shape_cast %13 : vector<1xf32> to vector<1x1x1xf32>
    %15 = vector.extract %14[0, 0, 0] : f32 from vector<1x1x1xf32>
    %cst_8 = arith.constant 4.096000e+03 : f32
    %16 = arith.divf %10, %cst_8 : f32
    %cst_9 = arith.constant 4.096000e+03 : f32
    %17 = arith.divf %15, %cst_9 : f32
    %18 = arith.mulf %16, %16 : f32
    %19 = arith.subf %17, %18 : f32
    %cst_10 = arith.constant 0.000000e+00 : f32
    %20 = arith.maximumf %19, %cst_10 : f32
    %21 = vector.broadcast %16 : f32 to vector<16x256xf32>
    %22 = arith.subf %6, %21 : vector<16x256xf32>
    %cst_11 = arith.constant 9.99999974E-6 : f32
    %23 = arith.addf %20, %cst_11 : f32
    %24 = math.rsqrt %23 : f32
    %25 = vector.broadcast %24 : f32 to vector<16x256xf32>
    %26 = arith.mulf %22, %25 : vector<16x256xf32>
    %cst_12 = arith.constant 0.000000e+00 : f32
    %27 = vector.broadcast %cst_12 : f32 to vector<16x256xf32>
    %28 = arith.maximumf %26, %27 : vector<16x256xf32>
    %c0_13 = arith.constant 0 : index
    %c0_14 = arith.constant 0 : index
    %29 = vector.load %arg2[%c0_13, %c0_14] : memref<1x256xi32, #tpu.memory_space<vmem>>, vector<1x256xi32>
    %c0_15 = arith.constant 0 : index
    %c0_16 = arith.constant 0 : index
    %30 = vector.load %arg3[%c0_15, %c0_16] : memref<1x256xi32, #tpu.memory_space<vmem>>, vector<1x256xi32>
    %cst_17 = arith.constant 0.000000e+00 : f32
    %31 = vector.broadcast %cst_17 : f32 to vector<32x256xf32>
    %c-1_i32 = arith.constant -1 : i32
    %32 = vector.broadcast %c-1_i32 : i32 to vector<1x256xi32>
    %33 = arith.addi %29, %32 : vector<1x256xi32>
    %c0_i32 = arith.constant 0 : i32
    %34 = vector.broadcast %c0_i32 : i32 to vector<1x256xi32>
    %35 = arith.cmpi sge, %33, %34 : vector<1x256xi32>
    %c-1_i32_18 = arith.constant -1 : i32
    %36 = vector.broadcast %c-1_i32_18 : i32 to vector<1x256xi32>
    %37 = arith.addi %29, %36 : vector<1x256xi32>
    %c16_i32 = arith.constant 16 : i32
    %38 = vector.broadcast %c16_i32 : i32 to vector<1x256xi32>
    %39 = arith.cmpi slt, %37, %38 : vector<1x256xi32>
    %40 = arith.andi %35, %39 : vector<1x256xi1>
    %c-1_i32_19 = arith.constant -1 : i32
    %41 = vector.broadcast %c-1_i32_19 : i32 to vector<1x256xi32>
    %42 = arith.addi %30, %41 : vector<1x256xi32>
    %c0_i32_20 = arith.constant 0 : i32
    %43 = vector.broadcast %c0_i32_20 : i32 to vector<1x256xi32>
    %44 = arith.cmpi sge, %42, %43 : vector<1x256xi32>
    %c-1_i32_21 = arith.constant -1 : i32
    %45 = vector.broadcast %c-1_i32_21 : i32 to vector<1x256xi32>
    %46 = arith.addi %30, %45 : vector<1x256xi32>
    %c16_i32_22 = arith.constant 16 : i32
    %47 = vector.broadcast %c16_i32_22 : i32 to vector<1x256xi32>
    %48 = arith.cmpi slt, %46, %47 : vector<1x256xi32>
    %49 = arith.andi %44, %48 : vector<1x256xi1>
    %50 = arith.andi %40, %49 : vector<1x256xi1>
    %c17_i32 = arith.constant 17 : i32
    %51 = tpu.dynamic_rotate %28 by %c17_i32 dim 1 : vector<16x256xf32>, i32 -> vector<16x256xf32>
    %cst_23 = arith.constant 0.000000e+00 : f32
    %52 = vector.shape_cast %50 : vector<1x256xi1> to vector<1x256xi1>
    %53 = vector.broadcast %52 : vector<1x256xi1> to vector<16x256xi1>
    %54 = vector.broadcast %cst_23 : f32 to vector<16x256xf32>
    %55 = arith.select %53, %51, %54 : vector<16x256xi1>, vector<16x256xf32>
    %c0_24 = arith.constant 0 : index
    %c0_25 = arith.constant 0 : index
    %c0_26 = arith.constant 0 : index
    %56 = vector.load %arg6[%c0_24, %c0_25, %c0_26] : memref<9x32x16xf32, #tpu.memory_space<vmem>>, vector<1x32x16xf32>
    %57 = vector.shape_cast %56 : vector<1x32x16xf32> to vector<32x16xf32>
    %cst_27 = arith.constant dense<0.000000e+00> : vector<32x256xf32>
    %58 = tpu.matmul %57, %55, %cst_27 {dimension_numbers = #tpu.dot_dimension_numbers<[1], [0], [0], [1], [0, 0, 1, 1], [], []>} : vector<32x16xf32>, vector<16x256xf32>, vector<32x256xf32> -> vector<32x256xf32>
    %59 = arith.addf %31, %58 : vector<32x256xf32>
    %c0_i32_28 = arith.constant 0 : i32
    %60 = vector.broadcast %c0_i32_28 : i32 to vector<1x256xi32>
    %61 = arith.addi %30, %60 : vector<1x256xi32>
    %c0_i32_29 = arith.constant 0 : i32
    %62 = vector.broadcast %c0_i32_29 : i32 to vector<1x256xi32>
    %63 = arith.cmpi sge, %61, %62 : vector<1x256xi32>
    %c0_i32_30 = arith.constant 0 : i32
    %64 = vector.broadcast %c0_i32_30 : i32 to vector<1x256xi32>
    %65 = arith.addi %30, %64 : vector<1x256xi32>
    %c16_i32_31 = arith.constant 16 : i32
    %66 = vector.broadcast %c16_i32_31 : i32 to vector<1x256xi32>
    %67 = arith.cmpi slt, %65, %66 : vector<1x256xi32>
    %68 = arith.andi %63, %67 : vector<1x256xi1>
    %69 = arith.andi %40, %68 : vector<1x256xi1>
    %c16_i32_32 = arith.constant 16 : i32
    %70 = tpu.dynamic_rotate %28 by %c16_i32_32 dim 1 : vector<16x256xf32>, i32 -> vector<16x256xf32>
    %cst_33 = arith.constant 0.000000e+00 : f32
    %71 = vector.shape_cast %69 : vector<1x256xi1> to vector<1x256xi1>
    %72 = vector.broadcast %71 : vector<1x256xi1> to vector<16x256xi1>
    %73 = vector.broadcast %cst_33 : f32 to vector<16x256xf32>
    %74 = arith.select %72, %70, %73 : vector<16x256xi1>, vector<16x256xf32>
    %c1 = arith.constant 1 : index
    %c0_34 = arith.constant 0 : index
    %c0_35 = arith.constant 0 : index
    %75 = vector.load %arg6[%c1, %c0_34, %c0_35] : memref<9x32x16xf32, #tpu.memory_space<vmem>>, vector<1x32x16xf32>
    %76 = vector.shape_cast %75 : vector<1x32x16xf32> to vector<32x16xf32>
    %cst_36 = arith.constant dense<0.000000e+00> : vector<32x256xf32>
    %77 = tpu.matmul %76, %74, %cst_36 {dimension_numbers = #tpu.dot_dimension_numbers<[1], [0], [0], [1], [0, 0, 1, 1], [], []>} : vector<32x16xf32>, vector<16x256xf32>, vector<32x256xf32> -> vector<32x256xf32>
    %78 = arith.addf %59, %77 : vector<32x256xf32>
    %c1_i32 = arith.constant 1 : i32
    %79 = vector.broadcast %c1_i32 : i32 to vector<1x256xi32>
    %80 = arith.addi %30, %79 : vector<1x256xi32>
    %c0_i32_37 = arith.constant 0 : i32
    %81 = vector.broadcast %c0_i32_37 : i32 to vector<1x256xi32>
    %82 = arith.cmpi sge, %80, %81 : vector<1x256xi32>
    %c1_i32_38 = arith.constant 1 : i32
    %83 = vector.broadcast %c1_i32_38 : i32 to vector<1x256xi32>
    %84 = arith.addi %30, %83 : vector<1x256xi32>
    %c16_i32_39 = arith.constant 16 : i32
    %85 = vector.broadcast %c16_i32_39 : i32 to vector<1x256xi32>
    %86 = arith.cmpi slt, %84, %85 : vector<1x256xi32>
    %87 = arith.andi %82, %86 : vector<1x256xi1>
    %88 = arith.andi %40, %87 : vector<1x256xi1>
    %c15_i32 = arith.constant 15 : i32
    %89 = tpu.dynamic_rotate %28 by %c15_i32 dim 1 : vector<16x256xf32>, i32 -> vector<16x256xf32>
    %cst_40 = arith.constant 0.000000e+00 : f32
    %90 = vector.shape_cast %88 : vector<1x256xi1> to vector<1x256xi1>
    %91 = vector.broadcast %90 : vector<1x256xi1> to vector<16x256xi1>
    %92 = vector.broadcast %cst_40 : f32 to vector<16x256xf32>
    %93 = arith.select %91, %89, %92 : vector<16x256xi1>, vector<16x256xf32>
    %c2 = arith.constant 2 : index
    %c0_41 = arith.constant 0 : index
    %c0_42 = arith.constant 0 : index
    %94 = vector.load %arg6[%c2, %c0_41, %c0_42] : memref<9x32x16xf32, #tpu.memory_space<vmem>>, vector<1x32x16xf32>
    %95 = vector.shape_cast %94 : vector<1x32x16xf32> to vector<32x16xf32>
    %cst_43 = arith.constant dense<0.000000e+00> : vector<32x256xf32>
    %96 = tpu.matmul %95, %93, %cst_43 {dimension_numbers = #tpu.dot_dimension_numbers<[1], [0], [0], [1], [0, 0, 1, 1], [], []>} : vector<32x16xf32>, vector<16x256xf32>, vector<32x256xf32> -> vector<32x256xf32>
    %97 = arith.addf %78, %96 : vector<32x256xf32>
    %c0_i32_44 = arith.constant 0 : i32
    %98 = vector.broadcast %c0_i32_44 : i32 to vector<1x256xi32>
    %99 = arith.addi %29, %98 : vector<1x256xi32>
    %c0_i32_45 = arith.constant 0 : i32
    %100 = vector.broadcast %c0_i32_45 : i32 to vector<1x256xi32>
    %101 = arith.cmpi sge, %99, %100 : vector<1x256xi32>
    %c0_i32_46 = arith.constant 0 : i32
    %102 = vector.broadcast %c0_i32_46 : i32 to vector<1x256xi32>
    %103 = arith.addi %29, %102 : vector<1x256xi32>
    %c16_i32_47 = arith.constant 16 : i32
    %104 = vector.broadcast %c16_i32_47 : i32 to vector<1x256xi32>
    %105 = arith.cmpi slt, %103, %104 : vector<1x256xi32>
    %106 = arith.andi %101, %105 : vector<1x256xi1>
    %c-1_i32_48 = arith.constant -1 : i32
    %107 = vector.broadcast %c-1_i32_48 : i32 to vector<1x256xi32>
    %108 = arith.addi %30, %107 : vector<1x256xi32>
    %c0_i32_49 = arith.constant 0 : i32
    %109 = vector.broadcast %c0_i32_49 : i32 to vector<1x256xi32>
    %110 = arith.cmpi sge, %108, %109 : vector<1x256xi32>
    %c-1_i32_50 = arith.constant -1 : i32
    %111 = vector.broadcast %c-1_i32_50 : i32 to vector<1x256xi32>
    %112 = arith.addi %30, %111 : vector<1x256xi32>
    %c16_i32_51 = arith.constant 16 : i32
    %113 = vector.broadcast %c16_i32_51 : i32 to vector<1x256xi32>
    %114 = arith.cmpi slt, %112, %113 : vector<1x256xi32>
    %115 = arith.andi %110, %114 : vector<1x256xi1>
    %116 = arith.andi %106, %115 : vector<1x256xi1>
    %c1_i32_52 = arith.constant 1 : i32
    %117 = tpu.dynamic_rotate %28 by %c1_i32_52 dim 1 : vector<16x256xf32>, i32 -> vector<16x256xf32>
    %cst_53 = arith.constant 0.000000e+00 : f32
    %118 = vector.shape_cast %116 : vector<1x256xi1> to vector<1x256xi1>
    %119 = vector.broadcast %118 : vector<1x256xi1> to vector<16x256xi1>
    %120 = vector.broadcast %cst_53 : f32 to vector<16x256xf32>
    %121 = arith.select %119, %117, %120 : vector<16x256xi1>, vector<16x256xf32>
    %c3 = arith.constant 3 : index
    %c0_54 = arith.constant 0 : index
    %c0_55 = arith.constant 0 : index
    %122 = vector.load %arg6[%c3, %c0_54, %c0_55] : memref<9x32x16xf32, #tpu.memory_space<vmem>>, vector<1x32x16xf32>
    %123 = vector.shape_cast %122 : vector<1x32x16xf32> to vector<32x16xf32>
    %cst_56 = arith.constant dense<0.000000e+00> : vector<32x256xf32>
    %124 = tpu.matmul %123, %121, %cst_56 {dimension_numbers = #tpu.dot_dimension_numbers<[1], [0], [0], [1], [0, 0, 1, 1], [], []>} : vector<32x16xf32>, vector<16x256xf32>, vector<32x256xf32> -> vector<32x256xf32>
    %125 = arith.addf %97, %124 : vector<32x256xf32>
    %c0_i32_57 = arith.constant 0 : i32
    %126 = vector.broadcast %c0_i32_57 : i32 to vector<1x256xi32>
    %127 = arith.addi %30, %126 : vector<1x256xi32>
    %c0_i32_58 = arith.constant 0 : i32
    %128 = vector.broadcast %c0_i32_58 : i32 to vector<1x256xi32>
    %129 = arith.cmpi sge, %127, %128 : vector<1x256xi32>
    %c0_i32_59 = arith.constant 0 : i32
    %130 = vector.broadcast %c0_i32_59 : i32 to vector<1x256xi32>
    %131 = arith.addi %30, %130 : vector<1x256xi32>
    %c16_i32_60 = arith.constant 16 : i32
    %132 = vector.broadcast %c16_i32_60 : i32 to vector<1x256xi32>
    %133 = arith.cmpi slt, %131, %132 : vector<1x256xi32>
    %134 = arith.andi %129, %133 : vector<1x256xi1>
    %135 = arith.andi %106, %134 : vector<1x256xi1>
    %cst_61 = arith.constant 0.000000e+00 : f32
    %136 = vector.shape_cast %135 : vector<1x256xi1> to vector<1x256xi1>
    %137 = vector.broadcast %136 : vector<1x256xi1> to vector<16x256xi1>
    %138 = vector.broadcast %cst_61 : f32 to vector<16x256xf32>
    %139 = arith.select %137, %28, %138 : vector<16x256xi1>, vector<16x256xf32>
    %c4 = arith.constant 4 : index
    %c0_62 = arith.constant 0 : index
    %c0_63 = arith.constant 0 : index
    %140 = vector.load %arg6[%c4, %c0_62, %c0_63] : memref<9x32x16xf32, #tpu.memory_space<vmem>>, vector<1x32x16xf32>
    %141 = vector.shape_cast %140 : vector<1x32x16xf32> to vector<32x16xf32>
    %cst_64 = arith.constant dense<0.000000e+00> : vector<32x256xf32>
    %142 = tpu.matmul %141, %139, %cst_64 {dimension_numbers = #tpu.dot_dimension_numbers<[1], [0], [0], [1], [0, 0, 1, 1], [], []>} : vector<32x16xf32>, vector<16x256xf32>, vector<32x256xf32> -> vector<32x256xf32>
    %143 = arith.addf %125, %142 : vector<32x256xf32>
    %c1_i32_65 = arith.constant 1 : i32
    %144 = vector.broadcast %c1_i32_65 : i32 to vector<1x256xi32>
    %145 = arith.addi %30, %144 : vector<1x256xi32>
    %c0_i32_66 = arith.constant 0 : i32
    %146 = vector.broadcast %c0_i32_66 : i32 to vector<1x256xi32>
    %147 = arith.cmpi sge, %145, %146 : vector<1x256xi32>
    %c1_i32_67 = arith.constant 1 : i32
    %148 = vector.broadcast %c1_i32_67 : i32 to vector<1x256xi32>
    %149 = arith.addi %30, %148 : vector<1x256xi32>
    %c16_i32_68 = arith.constant 16 : i32
    %150 = vector.broadcast %c16_i32_68 : i32 to vector<1x256xi32>
    %151 = arith.cmpi slt, %149, %150 : vector<1x256xi32>
    %152 = arith.andi %147, %151 : vector<1x256xi1>
    %153 = arith.andi %106, %152 : vector<1x256xi1>
    %c255_i32 = arith.constant 255 : i32
    %154 = tpu.dynamic_rotate %28 by %c255_i32 dim 1 : vector<16x256xf32>, i32 -> vector<16x256xf32>
    %cst_69 = arith.constant 0.000000e+00 : f32
    %155 = vector.shape_cast %153 : vector<1x256xi1> to vector<1x256xi1>
    %156 = vector.broadcast %155 : vector<1x256xi1> to vector<16x256xi1>
    %157 = vector.broadcast %cst_69 : f32 to vector<16x256xf32>
    %158 = arith.select %156, %154, %157 : vector<16x256xi1>, vector<16x256xf32>
    %c5 = arith.constant 5 : index
    %c0_70 = arith.constant 0 : index
    %c0_71 = arith.constant 0 : index
    %159 = vector.load %arg6[%c5, %c0_70, %c0_71] : memref<9x32x16xf32, #tpu.memory_space<vmem>>, vector<1x32x16xf32>
    %160 = vector.shape_cast %159 : vector<1x32x16xf32> to vector<32x16xf32>
    %cst_72 = arith.constant dense<0.000000e+00> : vector<32x256xf32>
    %161 = tpu.matmul %160, %158, %cst_72 {dimension_numbers = #tpu.dot_dimension_numbers<[1], [0], [0], [1], [0, 0, 1, 1], [], []>} : vector<32x16xf32>, vector<16x256xf32>, vector<32x256xf32> -> vector<32x256xf32>
    %162 = arith.addf %143, %161 : vector<32x256xf32>
    %c1_i32_73 = arith.constant 1 : i32
    %163 = vector.broadcast %c1_i32_73 : i32 to vector<1x256xi32>
    %164 = arith.addi %29, %163 : vector<1x256xi32>
    %c0_i32_74 = arith.constant 0 : i32
    %165 = vector.broadcast %c0_i32_74 : i32 to vector<1x256xi32>
    %166 = arith.cmpi sge, %164, %165 : vector<1x256xi32>
    %c1_i32_75 = arith.constant 1 : i32
    %167 = vector.broadcast %c1_i32_75 : i32 to vector<1x256xi32>
    %168 = arith.addi %29, %167 : vector<1x256xi32>
    %c16_i32_76 = arith.constant 16 : i32
    %169 = vector.broadcast %c16_i32_76 : i32 to vector<1x256xi32>
    %170 = arith.cmpi slt, %168, %169 : vector<1x256xi32>
    %171 = arith.andi %166, %170 : vector<1x256xi1>
    %c-1_i32_77 = arith.constant -1 : i32
    %172 = vector.broadcast %c-1_i32_77 : i32 to vector<1x256xi32>
    %173 = arith.addi %30, %172 : vector<1x256xi32>
    %c0_i32_78 = arith.constant 0 : i32
    %174 = vector.broadcast %c0_i32_78 : i32 to vector<1x256xi32>
    %175 = arith.cmpi sge, %173, %174 : vector<1x256xi32>
    %c-1_i32_79 = arith.constant -1 : i32
    %176 = vector.broadcast %c-1_i32_79 : i32 to vector<1x256xi32>
    %177 = arith.addi %30, %176 : vector<1x256xi32>
    %c16_i32_80 = arith.constant 16 : i32
    %178 = vector.broadcast %c16_i32_80 : i32 to vector<1x256xi32>
    %179 = arith.cmpi slt, %177, %178 : vector<1x256xi32>
    %180 = arith.andi %175, %179 : vector<1x256xi1>
    %181 = arith.andi %171, %180 : vector<1x256xi1>
    %c241_i32 = arith.constant 241 : i32
    %182 = tpu.dynamic_rotate %28 by %c241_i32 dim 1 : vector<16x256xf32>, i32 -> vector<16x256xf32>
    %cst_81 = arith.constant 0.000000e+00 : f32
    %183 = vector.shape_cast %181 : vector<1x256xi1> to vector<1x256xi1>
    %184 = vector.broadcast %183 : vector<1x256xi1> to vector<16x256xi1>
    %185 = vector.broadcast %cst_81 : f32 to vector<16x256xf32>
    %186 = arith.select %184, %182, %185 : vector<16x256xi1>, vector<16x256xf32>
    %c6 = arith.constant 6 : index
    %c0_82 = arith.constant 0 : index
    %c0_83 = arith.constant 0 : index
    %187 = vector.load %arg6[%c6, %c0_82, %c0_83] : memref<9x32x16xf32, #tpu.memory_space<vmem>>, vector<1x32x16xf32>
    %188 = vector.shape_cast %187 : vector<1x32x16xf32> to vector<32x16xf32>
    %cst_84 = arith.constant dense<0.000000e+00> : vector<32x256xf32>
    %189 = tpu.matmul %188, %186, %cst_84 {dimension_numbers = #tpu.dot_dimension_numbers<[1], [0], [0], [1], [0, 0, 1, 1], [], []>} : vector<32x16xf32>, vector<16x256xf32>, vector<32x256xf32> -> vector<32x256xf32>
    %190 = arith.addf %162, %189 : vector<32x256xf32>
    %c0_i32_85 = arith.constant 0 : i32
    %191 = vector.broadcast %c0_i32_85 : i32 to vector<1x256xi32>
    %192 = arith.addi %30, %191 : vector<1x256xi32>
    %c0_i32_86 = arith.constant 0 : i32
    %193 = vector.broadcast %c0_i32_86 : i32 to vector<1x256xi32>
    %194 = arith.cmpi sge, %192, %193 : vector<1x256xi32>
    %c0_i32_87 = arith.constant 0 : i32
    %195 = vector.broadcast %c0_i32_87 : i32 to vector<1x256xi32>
    %196 = arith.addi %30, %195 : vector<1x256xi32>
    %c16_i32_88 = arith.constant 16 : i32
    %197 = vector.broadcast %c16_i32_88 : i32 to vector<1x256xi32>
    %198 = arith.cmpi slt, %196, %197 : vector<1x256xi32>
    %199 = arith.andi %194, %198 : vector<1x256xi1>
    %200 = arith.andi %171, %199 : vector<1x256xi1>
    %c240_i32 = arith.constant 240 : i32
    %201 = tpu.dynamic_rotate %28 by %c240_i32 dim 1 : vector<16x256xf32>, i32 -> vector<16x256xf32>
    %cst_89 = arith.constant 0.000000e+00 : f32
    %202 = vector.shape_cast %200 : vector<1x256xi1> to vector<1x256xi1>
    %203 = vector.broadcast %202 : vector<1x256xi1> to vector<16x256xi1>
    %204 = vector.broadcast %cst_89 : f32 to vector<16x256xf32>
    %205 = arith.select %203, %201, %204 : vector<16x256xi1>, vector<16x256xf32>
    %c7 = arith.constant 7 : index
    %c0_90 = arith.constant 0 : index
    %c0_91 = arith.constant 0 : index
    %206 = vector.load %arg6[%c7, %c0_90, %c0_91] : memref<9x32x16xf32, #tpu.memory_space<vmem>>, vector<1x32x16xf32>
    %207 = vector.shape_cast %206 : vector<1x32x16xf32> to vector<32x16xf32>
    %cst_92 = arith.constant dense<0.000000e+00> : vector<32x256xf32>
    %208 = tpu.matmul %207, %205, %cst_92 {dimension_numbers = #tpu.dot_dimension_numbers<[1], [0], [0], [1], [0, 0, 1, 1], [], []>} : vector<32x16xf32>, vector<16x256xf32>, vector<32x256xf32> -> vector<32x256xf32>
    %209 = arith.addf %190, %208 : vector<32x256xf32>
    %c1_i32_93 = arith.constant 1 : i32
    %210 = vector.broadcast %c1_i32_93 : i32 to vector<1x256xi32>
    %211 = arith.addi %30, %210 : vector<1x256xi32>
    %c0_i32_94 = arith.constant 0 : i32
    %212 = vector.broadcast %c0_i32_94 : i32 to vector<1x256xi32>
    %213 = arith.cmpi sge, %211, %212 : vector<1x256xi32>
    %c1_i32_95 = arith.constant 1 : i32
    %214 = vector.broadcast %c1_i32_95 : i32 to vector<1x256xi32>
    %215 = arith.addi %30, %214 : vector<1x256xi32>
    %c16_i32_96 = arith.constant 16 : i32
    %216 = vector.broadcast %c16_i32_96 : i32 to vector<1x256xi32>
    %217 = arith.cmpi slt, %215, %216 : vector<1x256xi32>
    %218 = arith.andi %213, %217 : vector<1x256xi1>
    %219 = arith.andi %171, %218 : vector<1x256xi1>
    %c239_i32 = arith.constant 239 : i32
    %220 = tpu.dynamic_rotate %28 by %c239_i32 dim 1 : vector<16x256xf32>, i32 -> vector<16x256xf32>
    %cst_97 = arith.constant 0.000000e+00 : f32
    %221 = vector.shape_cast %219 : vector<1x256xi1> to vector<1x256xi1>
    %222 = vector.broadcast %221 : vector<1x256xi1> to vector<16x256xi1>
    %223 = vector.broadcast %cst_97 : f32 to vector<16x256xf32>
    %224 = arith.select %222, %220, %223 : vector<16x256xi1>, vector<16x256xf32>
    %c8 = arith.constant 8 : index
    %c0_98 = arith.constant 0 : index
    %c0_99 = arith.constant 0 : index
    %225 = vector.load %arg6[%c8, %c0_98, %c0_99] : memref<9x32x16xf32, #tpu.memory_space<vmem>>, vector<1x32x16xf32>
    %226 = vector.shape_cast %225 : vector<1x32x16xf32> to vector<32x16xf32>
    %cst_100 = arith.constant dense<0.000000e+00> : vector<32x256xf32>
    %227 = tpu.matmul %226, %224, %cst_100 {dimension_numbers = #tpu.dot_dimension_numbers<[1], [0], [0], [1], [0, 0, 1, 1], [], []>} : vector<32x16xf32>, vector<16x256xf32>, vector<32x256xf32> -> vector<32x256xf32>
    %228 = arith.addf %209, %227 : vector<32x256xf32>
    %c0_101 = arith.constant 0 : index
    %c0_102 = arith.constant 0 : index
    %229 = vector.load %arg7[%c0_101, %c0_102] : memref<32x1xf32, #tpu.memory_space<vmem>>, vector<32x1xf32>
    %230 = vector.broadcast %229 : vector<32x1xf32> to vector<32x256xf32>
    %231 = arith.addf %228, %230 : vector<32x256xf32>
    %c0_103 = arith.constant 0 : index
    %c0_104 = arith.constant 0 : index
    %c0_105 = arith.constant 0 : index
    %232 = vector.load %arg8[%c0_103, %c0_104, %c0_105] : memref<1x32x256xf32, #tpu.memory_space<vmem>>, vector<1x32x256xf32>
    %233 = vector.shape_cast %232 : vector<1x32x256xf32> to vector<32x256xf32>
    %234 = vector.shape_cast %231 : vector<32x256xf32> to vector<1x32x256xf32>
    tpu.vector_store %arg8[%c0_103, %c0_104, %c0_105], %234 {strides = array<i32>} : memref<1x32x256xf32, #tpu.memory_space<vmem>>, vector<1x32x256xf32>,
    %cst_106 = arith.constant dense<0.000000e+00> : vector<32xf32>
    %235 = vector.multi_reduction <add>, %231, %cst_106 [1] : vector<32x256xf32> to vector<32xf32>
    %236 = vector.shape_cast %235 : vector<32xf32> to vector<32x1xf32>
    %c0_107 = arith.constant 0 : index
    %c0_108 = arith.constant 0 : index
    %c0_109 = arith.constant 0 : index
    %237 = vector.load %arg9[%c0_107, %c0_108, %c0_109] : memref<1x32x1xf32, #tpu.memory_space<vmem>>, vector<1x32x1xf32>
    %238 = vector.shape_cast %237 : vector<1x32x1xf32> to vector<32x1xf32>
    %239 = vector.shape_cast %236 : vector<32x1xf32> to vector<1x32x1xf32>
    tpu.vector_store %arg9[%c0_107, %c0_108, %c0_109], %239 {strides = array<i32>} : memref<1x32x1xf32, #tpu.memory_space<vmem>>, vector<1x32x1xf32>,
    %240 = arith.mulf %231, %231 : vector<32x256xf32>
    %cst_110 = arith.constant dense<0.000000e+00> : vector<32xf32>
    %241 = vector.multi_reduction <add>, %240, %cst_110 [1] : vector<32x256xf32> to vector<32xf32>
    %242 = vector.shape_cast %241 : vector<32xf32> to vector<32x1xf32>
    %c0_111 = arith.constant 0 : index
    %c0_112 = arith.constant 0 : index
    %c0_113 = arith.constant 0 : index
    %243 = vector.load %arg10[%c0_111, %c0_112, %c0_113] : memref<1x32x1xf32, #tpu.memory_space<vmem>>, vector<1x32x1xf32>
    %244 = vector.shape_cast %243 : vector<1x32x1xf32> to vector<32x1xf32>
    %245 = vector.shape_cast %242 : vector<32x1xf32> to vector<1x32x1xf32>
    tpu.vector_store %arg10[%c0_111, %c0_112, %c0_113], %245 {strides = array<i32>} : memref<1x32x1xf32, #tpu.memory_space<vmem>>, vector<1x32x1xf32>,
    return
  }
  func.func @transform_0(%arg0: i32) -> (i32, i32, i32) {
    %c0_i32 = arith.constant 0 : i32
    %c0_i32_0 = arith.constant 0 : i32
    %c0_i32_1 = arith.constant 0 : i32
    return %arg0, %c0_i32, %c0_i32_0 : i32, i32, i32
  }
  func.func @transform_1(%arg0: i32) -> (i32, i32) {
    %c0_i32 = arith.constant 0 : i32
    %c0_i32_0 = arith.constant 0 : i32
    %c0_i32_1 = arith.constant 0 : i32
    return %c0_i32, %c0_i32_0 : i32, i32
  }
  func.func @transform_2(%arg0: i32) -> (i32, i32) {
    %c0_i32 = arith.constant 0 : i32
    %c0_i32_0 = arith.constant 0 : i32
    %c0_i32_1 = arith.constant 0 : i32
    return %c0_i32, %c0_i32_0 : i32, i32
  }
  func.func @transform_3(%arg0: i32) -> (i32, i32) {
    %c0_i32 = arith.constant 0 : i32
    %c0_i32_0 = arith.constant 0 : i32
    %c0_i32_1 = arith.constant 0 : i32
    return %c0_i32, %c0_i32_0 : i32, i32
  }
  func.func @transform_4(%arg0: i32) -> (i32, i32) {
    %c0_i32 = arith.constant 0 : i32
    %c0_i32_0 = arith.constant 0 : i32
    %c0_i32_1 = arith.constant 0 : i32
    return %c0_i32, %c0_i32_0 : i32, i32
  }
  func.func @transform_5(%arg0: i32) -> (i32, i32, i32) {
    %c0_i32 = arith.constant 0 : i32
    %c0_i32_0 = arith.constant 0 : i32
    %c0_i32_1 = arith.constant 0 : i32
    %c0_i32_2 = arith.constant 0 : i32
    return %c0_i32, %c0_i32_0, %c0_i32_1 : i32, i32, i32
  }
  func.func @transform_6(%arg0: i32) -> (i32, i32) {
    %c0_i32 = arith.constant 0 : i32
    %c0_i32_0 = arith.constant 0 : i32
    %c0_i32_1 = arith.constant 0 : i32
    return %c0_i32, %c0_i32_0 : i32, i32
  }
  func.func @transform_7(%arg0: i32) -> (i32, i32, i32) {
    %c0_i32 = arith.constant 0 : i32
    %c0_i32_0 = arith.constant 0 : i32
    %c0_i32_1 = arith.constant 0 : i32
    return %arg0, %c0_i32, %c0_i32_0 : i32, i32, i32
  }
  func.func @transform_8(%arg0: i32) -> (i32, i32, i32) {
    %c0_i32 = arith.constant 0 : i32
    %c0_i32_0 = arith.constant 0 : i32
    %c0_i32_1 = arith.constant 0 : i32
    return %arg0, %c0_i32, %c0_i32_0 : i32, i32, i32
  }
  func.func @transform_9(%arg0: i32) -> (i32, i32, i32) {
    %c0_i32 = arith.constant 0 : i32
    %c0_i32_0 = arith.constant 0 : i32
    %c0_i32_1 = arith.constant 0 : i32
    return %arg0, %c0_i32, %c0_i32_0 : i32, i32, i32
  }
}

</mosaic_0001>

<bundles_post_ra>
// kernel: tpu_custom_call.1
= control target key start
LH: loop header
LB: loop body
LE: loop exit
PB: predicated region body
PF: predicated region fallthrough
CT: control target
= control target key end

     0   :  { %s2823_s0 = inlined_call_operand.vmem [shape: f32[2,108,256], index: 0, kind: input, shape index: {}]   ;;  %s2824_s1 = inlined_call_operand.vmem [shape: s32[1,256], index: 1, kind: input, shape index: {}]   ;;  %s2825_s2 = inlined_call_operand.vmem [shape: s32[1,256], index: 2, kind: input, shape index: {}]   ;;  %s2826_s3 = inlined_call_operand.vmem [shape: f32[16,108], index: 3, kind: input, shape index: {}]   ;;  %s2827_s4 = inlined_call_operand.vmem [shape: f32[16,1], index: 4, kind: input, shape index: {}]   ;;  %s2828_s5 = inlined_call_operand.vmem [shape: f32[9,32,16], index: 5, kind: input, shape index: {}]   ;;  %s2829_s6 = inlined_call_operand.vmem [shape: f32[32,1], index: 6, kind: input, shape index: {}]   ;;  %s2830_s7 = inlined_call_operand.hbm [shape: f32[2,32,256], index: 7, kind: output, shape index: {0}]   ;;  %s2831_s8 = inlined_call_operand.vmem [shape: f32[2,32,1], index: 8, kind: output, shape index: {1}]   ;;  %s2832_s9 = inlined_call_operand.vmem [shape: f32[2,32,1], index: 9, kind: output, shape index: {2}]  }
   0x1   :  { %2834 = sst [smem:[#allocation5_spill]] %s2823_s0 }
   0x2   :  { %2835 = sst [smem:[#allocation6_spill]] %s2824_s1 }
   0x3   :  { %15 = vsyncpa [#allocation3], 0 }
   0x4   :  { %17 = vsyncpa [#allocation3 + $0x1], 0  ;;  %s2067_s30 = smov 0   ;;  %s2069_s10 = smov 0  }
   0x5   :  { %s2071_s11 = smov 0   ;;  %s2073_s12 = smov 0  }
   0x6 LB: > { %s2088_s13 = sadd.s32 4294967295, %s2003_s12   ;;  %s1710_s14 = sadd.s32 4294967294, %s2003_s12   ;;  %s2003_s12 = sphi %s2073_s12, %s2888_s12   ;;  %s1999_s11 = sphi %s2071_s11, %s2887_s11   ;;  %s1995_s10 = sphi %s2069_s10, %s2886_s10   ;;  %s1991_s30 = sphi %s2067_s30, %s2885_s30  }
   0x7   : > { %s2092_s15 = sadd.s32 1, %s2003_s12   ;;  %s182_s16 = sadd.s32 1, %s1999_s11 }
   0x8   : > { %s179_s17 = ssub.s32 %s2003_s12, %s2092_s15  ;;  %p192_p0 = scmp.ne.s32.totalorder %s1999_s11, %s1995_s10 }
   0x9   : > { %p180_p1 = scmp.eq.s32.totalorder %s179_s17, 0  ;;  %p193_p2 = scmp.eq.s32.totalorder %s2088_s13, 1 }
   0xa   : > { %p198_p3 = scmp.ne.s32.totalorder %s1995_s10, %s1991_s30  ;;  %p199_p4 = scmp.eq.s32.totalorder %s1710_s14, 1 }
   0xb   : > { %s2103_s18 = scalar_select %p180_p1, %s1999_s11, %s182_s16  }
   0xc   : > { %p2105_p5 = por %p193_p2, %p192_p0  ;;  %p2109_p6 = por %p199_p4, %p198_p3 }
   0xd   : > { %p1713_p7 = scmp.ge.s32.totalorder %s2003_s12, 1  ;;  %p295_p8 = scmp.lt.s32.totalorder %s2003_s12, 3 }
   0xf   : > { %p296_p9 = pnand %p1713_p7, %p295_p8 }
  0x10   : > { %p341_p10 = scmp.lt.s32.totalorder (!%p296_p9), %s2088_s13, 1  ;;  %s2838_s0 = sld [smem:[#allocation5_spill]] (!%p296_p9) }
  0x11   : > { %299 = sbr.rel (%p296_p9) target bundleno = 1000 (0x3e8), region = 48  ;;  %s2007_s14 = smov (!%p296_p9), 0.0  }
  0x12   : > { %s2839_s1 = sld [smem:[#allocation6_spill]] (!%p296_p9) }
  0x16   : > { %s2117_s21 = scalar_select %p341_p10, %s2088_s13, 1  ;;  %v386_v0 = vld [vmem:[%s2827_s4] sm:$0xff]  ;;  %v2005_v1 = vmov 0   ;;  %vm405_vm0 = vcmask 1043456   ;;  %v387_v14 = vld [vmem:[%s2827_s4 + $0x8] sm:$0xff]  ;;  %vm398_vm1 = vcmask 883712  }
  0x17   : > { %1934 = vset.pattern.permute.xlu0 %v2005_v1  ;;  %1935 = vset.pattern.permute.xlu1 %v2005_v1  ;;  %v356_v31 = vld [vmem:[%s2826_s3] sm:$0xff]  ;;  %v357_v32 = vld [vmem:[%s2826_s3 + $0x8] sm:$0xff]  ;;  %v2006_v53 = vmov 4096.0  }
  0x18   : > { %s1874_s24 = smul.u32 224, %s2117_s21  ;;  %390 = vperm.xlu0 %1934, %v386_v0   ;;  %1936 = vset.pattern.permute.xlu2 %v2005_v1  ;;  %1937 = vrcp.f32 %v2006_v53 }
  0x1a   : > { %s2129_s27 = scalar_lea.vmem %s2838_s0, %s1874_s24 }
  0x1b   : > { %v384_v2 = vld [vmem:[%s2129_s27 + $0xd0] sm:$0xf]  ;;  %v385_v3 = vld [vmem:[%s2129_s27 + $0xd8] sm:$0xf]  ;;  %v382_v4 = vld [vmem:[%s2129_s27 + $0xc0] sm:$0xff] }
  0x1c   : > { %1720 = vmatpush.msk.msra.mxu0 %vm405_vm0, %v384_v2  ;;  %1723 = vmatpush.msk.msra.mxu1 %vm405_vm0, %v385_v3  ;;  %v383_v5 = vld [vmem:[%s2129_s27 + $0xc8] sm:$0xff]  ;;  %v380_v6 = vld [vmem:[%s2129_s27 + $0xb0] sm:$0xff]  ;;  %v381_v7 = vld [vmem:[%s2129_s27 + $0xb8] sm:$0xff] }
  0x1d   : > { %v378_v8 = vld [vmem:[%s2129_s27 + $0xa0] sm:$0xff]  ;;  %v379_v9 = vld [vmem:[%s2129_s27 + $0xa8] sm:$0xff]  ;;  %v376_v10 = vld [vmem:[%s2129_s27 + $0x90] sm:$0xff] }
  0x1e   : > { %415 = vmatpush.msra.mxu0 %v382_v4  ;;  %438 = vmatpush.msra.mxu1 %v383_v5  ;;  %v377_v11 = vld [vmem:[%s2129_s27 + $0x98] sm:$0xff]  ;;  %v374_v12 = vld [vmem:[%s2129_s27 + $0x80] sm:$0xff]  ;;  %v375_v13 = vld [vmem:[%s2129_s27 + $0x88] sm:$0xff]  ;;  %v1938_v54 = vpop.eup %1937 }
  0x1f   : > { %v372_v15 = vld [vmem:[%s2129_s27 + $0x70] sm:$0xff]  ;;  %v373_v16 = vld [vmem:[%s2129_s27 + $0x78] sm:$0xff]  ;;  %v370_v17 = vld [vmem:[%s2129_s27 + $0x60] sm:$0xff]  ;;  %v487_v58 = vmul.f32 4096.0, %v1938_v54  ;;  %vm491_vm2 = vweird.f32 %v1938_v54 }
  0x20   : > { %416 = vmatpush.msra.mxu0 %v380_v6  ;;  %439 = vmatpush.msra.mxu1 %v381_v7  ;;  %v371_v18 = vld [vmem:[%s2129_s27 + $0x68] sm:$0xff]  ;;  %v368_v19 = vld [vmem:[%s2129_s27 + $0x50] sm:$0xff]  ;;  %v369_v20 = vld [vmem:[%s2129_s27 + $0x58] sm:$0xff] }
  0x21   : > { %395 = vperm.xlu0 %1934, %v387_v14   ;;  %v366_v21 = vld [vmem:[%s2129_s27 + $0x40] sm:$0xff]  ;;  %v367_v22 = vld [vmem:[%s2129_s27 + $0x48] sm:$0xff]  ;;  %v364_v23 = vld [vmem:[%s2129_s27 + $0x30] sm:$0xff]  ;;  %v488_v61 = vsub.f32 1.0, %v487_v58 }
  0x22   : > { %417 = vmatpush.msra.mxu0 %v378_v8  ;;  %440 = vmatpush.msra.mxu1 %v379_v9  ;;  %v365_v24 = vld [vmem:[%s2129_s27 + $0x38] sm:$0xff]  ;;  %v362_v25 = vld [vmem:[%s2129_s27 + $0x20] sm:$0xff]  ;;  %v363_v26 = vld [vmem:[%s2129_s27 + $0x28] sm:$0xff] }
  0x23   : > { %v360_v27 = vld [vmem:[%s2129_s27 + $0x10] sm:$0xff]  ;;  %v361_v28 = vld [vmem:[%s2129_s27 + $0x18] sm:$0xff]  ;;  %v358_v29 = vld [vmem:[%s2129_s27] sm:$0xff]  ;;  %v489_v4 = vmul.f32 %v1938_v54, %v488_v61 }
  0x24   : > { %418 = vmatpush.msra.mxu0 %v376_v10  ;;  %441 = vmatpush.msra.mxu1 %v377_v11  ;;  %v359_v30 = vld [vmem:[%s2129_s27 + $0x8] sm:$0xff]  ;;  %v1726_v58 = vld [vmem:[%s2828_s5 + $0x20] sm:$0xff] }
  0x25   : > { %v490_v7 = vadd.f32 %v1938_v54, %v489_v4 }
  0x26   : > { %419 = vmatpush.msra.mxu0 %v374_v12  ;;  %442 = vmatpush.msra.mxu1 %v375_v13 }
  0x27   : > { %v492_v10 = vsel %vm491_vm2, %v1938_v54, %v490_v7  ;;  %v1727_v7 = vld [vmem:[%s2828_s5 + $0x28] sm:$0xff] }
  0x28   : > { %420 = vmatpush.msra.mxu0 %v372_v15  ;;  %443 = vmatpush.msra.mxu1 %v373_v16 }
  0x2a   : > { %421 = vmatpush.msra.mxu0 %v370_v17  ;;  %444 = vmatpush.msra.mxu1 %v371_v18 }
  0x2c   : > { %422 = vmatpush.msra.mxu0 %v368_v19  ;;  %445 = vmatpush.msra.mxu1 %v369_v20 }
  0x2e   : > { %423 = vmatpush.msra.mxu0 %v366_v21  ;;  %446 = vmatpush.msra.mxu1 %v367_v22 }
  0x30   : > { %424 = vmatpush.msra.mxu0 %v364_v23  ;;  %447 = vmatpush.msra.mxu1 %v365_v24 }
  0x32   : > { %425 = vmatpush.msra.mxu0 %v362_v25  ;;  %448 = vmatpush.msra.mxu1 %v363_v26 }
  0x34   : > { %426 = vmatpush.msra.mxu0 %v360_v27  ;;  %449 = vmatpush.msra.mxu1 %v361_v28 }
  0x36   : > { %427 = vmatpush.msra.mxu0 %v358_v29  ;;  %450 = vmatpush.msra.mxu1 %v359_v30 }
  0x37   : > { %1721 = vmatmul.msk.f32.vlgmr.msra.gmra.mxu0 %vm398_vm1, %v356_v31  ;;  %1724 = vmatmul.msk.f32.vlgmr.msra.gmra.mxu1 %vm398_vm1, %v356_v31 }
  0x3f   : > { %1722 = vmatmul.msk.f32.gmra.mxu0 %vm398_vm1, %v357_v32  ;;  %1725 = vmatmul.msk.f32.gmra.mxu1 %vm398_vm1, %v357_v32 }
  0x8a   : > { %v391_v33 = vpop.permute.xlu0 %390 }
  0x93   : > { %v396_v38 = vpop.permute.xlu0 %395 }
  0xb4   : > { %v429_v34 = vpop.f32.mrf.mxu0  ;;  %v452_v35 = vpop.f32.mrf.mxu1 }
  0xb5   : > { %v2168_v36 = vadd.f32 %v429_v34, %v391_v33  ;;  %v2170_v37 = vadd.f32 %v452_v35, %v391_v33  ;;  %v535_v33 = vld [vmem:[%s2825_s2] sm:$0x3] }
  0xb6   : > { %v2237_v34 = vld [vmem:[%s2839_s1] sm:$0x3]  ;;  %vm573_vm6 = vcmp.ge.s32.totalorder %v535_v33, 0  ;;  %vm574_vm7 = vcmp.lt.s32.totalorder %v535_v33, 16 }
  0xb7   : > { %v458_v42 = vadd.f32 %v2170_v37, %v2168_v36  ;;  %v470_v43 = vmul.f32 %v2168_v36, %v2168_v36  ;;  %v471_v44 = vmul.f32 %v2170_v37, %v2170_v37  ;;  %v1163_v35 = vadd.s32 1, %v2237_v34  ;;  %vm2240_vm8 = vmand %vm573_vm6, %vm574_vm7 }
  0xb9   : > { %v474_v49 = vadd.f32 %v471_v44, %v470_v43  ;;  %vm1164_vm9 = vcmp.ge.s32.totalorder %v1163_v35, 0  ;;  %vm1165_vm10 = vcmp.lt.s32.totalorder %v1163_v35, 16 }
  0xba   : > { %vm2244_vm11 = vmand %vm1164_vm9, %vm1165_vm10  ;;  %vm604_vm9 = vcmask 130048  }
  0xbb   : > { %vm1273_vm12 = vmand %vm2244_vm11, %vm2240_vm8 }
  0xbc   : > { %v432_v39 = vpop.f32.mrf.mxu0  ;;  %v455_v40 = vpop.f32.mrf.mxu1 }
  0xbd   : > { %v2172_v41 = vadd.f32 %v432_v39, %v396_v38  ;;  %v2180_v45 = vadd.f32 %v455_v40, %v396_v38  ;;  %v536_v38 = vadd.s32 4294967295, %v2237_v34  ;;  %v1486_v40 = vld [vmem:[%s2829_s6 + $0x8] sm:$0xff]  ;;  %v1770_v39 = vld [vmem:[%s2828_s5 + $0x60] sm:$0xff] }
  0xbf   : > { %v459_v46 = vadd.f32 %v458_v42, %v2172_v41  ;;  %v472_v47 = vmul.f32 %v2172_v41, %v2172_v41  ;;  %v473_v51 = vmul.f32 %v2180_v45, %v2180_v45  ;;  %vm537_vm13 = vcmp.ge.s32.totalorder %v536_v38, 0 }
  0xc0   : > { %vm538_vm14 = vcmp.lt.s32.totalorder %v536_v38, 16 }
  0xc1   : > { %v460_v48 = vadd.f32 %v459_v46, %v2180_v45  ;;  %v475_v50 = vadd.f32 %v474_v49, %v472_v47  ;;  %vm2258_vm15 = vmand %vm537_vm13, %vm538_vm14 }
  0xc2   : > { %vm576_vm0 = vmand %vm2258_vm15, %vm2240_vm8 }
  0xc3   : > { %461 = vadd.xlane.f32.xlu1 %v460_v48  ;;  %v476_v52 = vadd.f32 %v475_v50, %v473_v51  ;;  %v590_v43 = vsel %vm576_vm0, 1, %v2005_v1 }
  0xc4   : > { %v592_v46 = vperm.slane %v590_v43, 1 }
  0xcb   : > { %477 = vadd.xlane.f32.xlu1 %v476_v52  ;;  %v540_v52 = vadd.s32 4294967295, %v535_v33 }
 0x136   : > { %v462_v55 = vpop.xlane.xlu1 %461 }
 0x137   : > { %v463_v56 = vrot.slane %v462_v55, 4 }
 0x139   : > { %v464_v57 = vadd.f32 %v463_v56, %v462_v55 }
 0x13b   : > { %v465_v59 = vrot.slane %v464_v57, 2 }
 0x13d   : > { %v466_v60 = vadd.f32 %v465_v59, %v464_v57 }
 0x13e   : > { %v478_v62 = vpop.xlane.xlu1 %477 }
 0x13f   : > { %v479_v63 = vrot.slane %v478_v62, 4  ;;  %v467_v0 = vrot.slane %v466_v60, 1 }
 0x141   : > { %v480_v2 = vadd.f32 %v479_v63, %v478_v62  ;;  %v468_v3 = vadd.f32 %v467_v0, %v466_v60  ;;  %v745_v0 = vadd.s32 1, %v535_v33  ;;  %v1729_v33 = vld [vmem:[%s2828_s5 + $0x38] sm:$0xff] }
 0x143   : > { %v481_v5 = vrot.slane %v480_v2, 2  ;;  %1875 = vpush %v468_v3  ;;  %vm746_vm0 = vcmp.ge.s32.totalorder %v745_v0, 0 }
 0x145   : > { %v482_v6 = vadd.f32 %v481_v5, %v480_v2 }
 0x147   : > { %v483_v8 = vrot.slane %v482_v6, 1 }
 0x149   : > { %v484_v9 = vadd.f32 %v483_v8, %v482_v6 }
 0x14b   : > { %1877 = vpush %v484_v9 }
 0x14c   : > { %1879 = vpush %v492_v10 }
 0x174   : > { %s1876_s23 = spop %1875 }
 0x17c   : > { %s1878_s24 = spop %1877 }
 0x17d   : > { %s1880_s25 = spop %1879 }
 0x17e   : > { %s494_s26 = smul.f32 %s1880_s25, %s1876_s23  ;;  %s2833_s23 = smov 16  }
 0x17f   : > { %s503_s27 = smul.f32 %s1880_s25, %s1878_s24  ;;  %s2009_s24 = smov 15  }
 0x180   : > { %s504_s28 = smul.f32 %s494_s26, %s494_s26  ;;  %v507_v19 = vstv %s494_s26  ;;  %s2010_s25 = smov 17  }
 0x181   : > { %v508_v20 = vsub.f32 %v2168_v36, %v507_v19  ;;  %v509_v21 = vsub.f32 %v2170_v37, %v507_v19  ;;  %v510_v22 = vsub.f32 %v2172_v41, %v507_v19  ;;  %v511_v30 = vsub.f32 %v2180_v45, %v507_v19  ;;  %s2011_s26 = smov 1  }
 0x182   : > { %s505_s29 = ssub.f32 %s503_s27, %s504_s28  ;;  %s2012_s27 = smov 127   ;;  %v553_v41 = vlaneseq  ;;  %v591_v45 = vperm.slane %v590_v43, 0  ;;  %v1754_v43 = vld [vmem:[%s2828_s5 + $0x40] sm:$0xff] }
 0x183   : > { %s2013_s28 = smov 113  }
 0x184   : > { %s506_s16 = smax.f32 %s2007_s14, %s505_s29  ;;  %s2014_s29 = smov 112   ;;  %v2272_v44 = vand.u32 127, %v553_v41  ;;  %vm2277_vm2 = vcmp.eq.s32.totalorder %v591_v45, 1 }
 0x185   : > { %s512_s17 = sadd.f32 1e-05, %s506_s16  ;;  %s2015_s14 = smov 111  }
 0x186   : > { %vm585_vm1 = vcmp.lt.s32.totalorder %v2272_v44, 16  ;;  %vm555_vm10 = vcmp.lt.s32.totalorder %v2272_v44, 17 }
 0x187   : > { %v513_v11 = vstv %s512_s17 }
 0x188   : > { %1939 = vrsqrt.f32 %v513_v11  ;;  %vm520_vm4 = vweird.f32 %v513_v11 }
 0x18e   : > { %v1940_v12 = vpop.eup %1939 }
 0x18f   : > { %v515_v13 = vmul.f32 %v1940_v12, %v513_v11  ;;  %vm521_vm3 = vweird.f32 %v1940_v12 }
 0x190   : > { %vm522_vm5 = vmor %vm520_vm4, %vm521_vm3  ;;  %vm2281_vm3 = vcmp.eq.s32.totalorder %v592_v46, 1  ;;  %vm541_vm4 = vcmp.ge.s32.totalorder %v540_v52, 0 }
 0x191   : > { %v516_v14 = vmul.f32 %v1940_v12, %v515_v13 }
 0x193   : > { %v517_v15 = vmul.f32 0.5, %v516_v14 }
 0x195   : > { %v518_v16 = vsub.f32 1.5, %v517_v15  ;;  %v1728_v15 = vld [vmem:[%s2828_s5 + $0x30] sm:$0xff] }
 0x197   : > { %v519_v17 = vmul.f32 %v1940_v12, %v518_v16 }
 0x199   : > { %v523_v18 = vsel %vm522_vm5, %v1940_v12, %v519_v17  ;;  %vm542_vm5 = vcmp.lt.s32.totalorder %v540_v52, 16  ;;  %v1755_v52 = vld [vmem:[%s2828_s5 + $0x48] sm:$0xff] }
 0x19a   : > { %1881 = vpush %v523_v18  ;;  %vm2293_vm6 = vmand %vm541_vm4, %vm542_vm5 }
 0x19b   : > { %vm544_vm7 = vmand %vm2258_vm15, %vm2293_vm6 }
 0x19c   : > { %v560_v59 = vsel %vm544_vm7, 1, %v2005_v1 }
 0x19d   : > { %v561_v62 = vperm.slane %v560_v59, 0  ;;  %v562_v63 = vperm.slane %v560_v59, 1 }
 0x19f   : > { %vm2316_vm13 = vcmp.eq.s32.totalorder %v561_v62, 1  ;;  %vm2320_vm14 = vcmp.eq.s32.totalorder %v562_v63, 1  ;;  %v1834_v62 = vld [vmem:[%s2828_s5 + $0xe0] sm:$0xff] }
 0x1cb   : > { %s1882_s22 = spop %1881 }
 0x1cc   : > { %v525_v23 = vstv %s1882_s22 }
 0x1cd   : > { %v526_v24 = vmul.f32 %v525_v23, %v508_v20  ;;  %v527_v25 = vmul.f32 %v525_v23, %v509_v21  ;;  %v528_v26 = vmul.f32 %v525_v23, %v510_v22  ;;  %v529_v31 = vmul.f32 %v525_v23, %v511_v30 }
 0x1cf   : > { %v2191_v27 = vmax.f32 %v526_v24, 0.0  ;;  %v2193_v28 = vmax.f32 %v527_v25, 0.0  ;;  %v2195_v29 = vmax.f32 %v528_v26, 0.0  ;;  %v2204_v32 = vmax.f32 %v529_v31, 0.0  ;;  %v1786_v26 = vld [vmem:[%s2828_s5 + $0x80] sm:$0xff] }
 0x1d1   : > { %579 = vrot.lane.b32.xlu2 %v2195_v29, %s2833_s23  ;;  %581 = vrot.lane.b32.xlu1 %v2193_v28, %s2833_s23 }
 0x1d2   : > { %577 = vrot.lane.b32.xlu0 %v2191_v27, %s2833_s23 }
 0x1d9   : > { %583 = vrot.lane.b32.xlu2 %v2204_v32, %s2833_s23  ;;  %754 = vrot.lane.b32.xlu1 %v2193_v28, %s2009_s24 }
 0x1da   : > { %551 = vrot.lane.b32.xlu0 %v2204_v32, %s2010_s25 }
 0x1e1   : > { %547 = vrot.lane.b32.xlu2 %v2195_v29, %s2010_s25  ;;  %859 = vrot.lane.b32.xlu1 %v2191_v27, %s2011_s26 }
 0x1e2   : > { %549 = vrot.lane.b32.xlu0 %v2193_v28, %s2010_s25 }
 0x1e9   : > { %1064 = vrot.lane.b32.xlu1 %v2204_v32, %s2012_s27  ;;  %545 = vrot.lane.b32.xlu2 %v2191_v27, %s2010_s25  ;;  %s324_s25 = sand.u32 1, %s1995_s10  }
 0x1ea   : > { %756 = vrot.lane.b32.xlu0 %v2204_v32, %s2009_s24 }
 0x1f1   : > { %1170 = vrot.lane.b32.xlu1 %v2195_v29, %s2013_s28  ;;  %752 = vrot.lane.b32.xlu2 %v2195_v29, %s2009_s24 }
 0x1f2   : > { %861 = vrot.lane.b32.xlu0 %v2195_v29, %s2011_s26 }
 0x1f9   : > { %1172 = vrot.lane.b32.xlu1 %v2193_v28, %s2013_s28  ;;  %750 = vrot.lane.b32.xlu2 %v2191_v27, %s2009_s24 }
 0x1fa   : > { %863 = vrot.lane.b32.xlu0 %v2193_v28, %s2011_s26 }
 0x201   : > { %1274 = vrot.lane.b32.xlu1 %v2191_v27, %s2014_s29  ;;  %865 = vrot.lane.b32.xlu2 %v2204_v32, %s2011_s26  ;;  %s1714_s26 = sshll.u32 %s324_s25, 6 }
 0x202   : > { %1058 = vrot.lane.b32.xlu0 %v2191_v27, %s2012_s27 }
 0x209   : > { %1386 = vrot.lane.b32.xlu1 %v2204_v32, %s2015_s14  ;;  %1060 = vrot.lane.b32.xlu2 %v2195_v29, %s2012_s27 }
 0x20a   : > { %1174 = vrot.lane.b32.xlu0 %v2204_v32, %s2013_s28 }
 0x211   : > { %1062 = vrot.lane.b32.xlu2 %v2193_v28, %s2012_s27  ;;  %s2749_s27 = scalar_lea.vmem [#allocation2], %s1714_s26 }
 0x212   : > { %1276 = vrot.lane.b32.xlu0 %v2195_v29, %s2014_s29  ;;  %s1589_s17 = sshll.u32 %s2749_s27, 4  ;;  %s1590_s17 = int_to_ptr.vmem [resolvable:$true] %s1589_s17 }
 0x219   : > { %1168 = vrot.lane.b32.xlu2 %v2191_v27, %s2013_s28  ;;  %s1873_s28 = sshll.u32 %s2088_s13, 6  ;;  %s1567_s13 = scalar_lea.sflag [#allocation3], %s324_s25 }
 0x21a   : > { %1278 = vrot.lane.b32.xlu0 %v2193_v28, %s2014_s29  ;;  %s1588_s16 = scalar_lea.hbm %s2830_s7, %s1873_s28 }
 0x21b   : > { %s1591_s22 = sshll.u32 %s1588_s16, 4  ;;  %s1592_s22 = int_to_ptr.hbm [resolvable:$true] %s1591_s22 }
 0x21c   : > { %s1955_s24 = sshra.s32 %s1592_s22, 4  ;;  %s1956_s24 = int_to_ptr.hbm [resolvable:$true] %s1955_s24 }
 0x21d   : > { %s1957_s26 = scalar_lea.hbm %s1956_s24, 64  ;;  %p1962_p0 = scmp.lt.s32.totalorder %s1956_s24, %s2830_s7 }
 0x21e   : > { %p1958_p11 = scmp.ne.s32.totalorder %s1956_s24, %s1957_s26 }
 0x220   : > { %p1959_p12 = pnand %p1958_p11, %p2105_p5 }
 0x221   : > { %1280 = vrot.lane.b32.xlu2 %v2204_v32, %s2014_s29 }
 0x222   : > { %1380 = vrot.lane.b32.xlu0 %v2191_v27, %s2015_s14  ;;  %p1960_p13 = pneg %p1959_p12 }
 0x229   : > { %1382 = vrot.lane.b32.xlu2 %v2195_v29, %s2015_s14 }
 0x22a   : > { %1496 = vperm.xlu0 %1934, %v1486_v40  }
 0x22b   : > { %v580_v42 = vpop.permute.xlu2 %579 }
 0x231   : > { %1384 = vrot.lane.b32.xlu2 %v2193_v28, %s2015_s14  ;;  %s1961_s14 = scalar_lea.hbm %s2830_s7, 128 }
 0x232   : > { %p1963_p1 = scmp.lt.s32.totalorder %s1961_s14, %s1957_s26 }
 0x233   : > { %v584_v49 = vpop.permute.xlu2 %583 }
 0x234   : > { %v589_v50 = vsel %vm585_vm1, %v584_v49, %v580_v42  ;;  %v587_v51 = vsel %vm585_vm1, %v580_v42, %v584_v49  ;;  %p1964_p2 = por %p1963_p1, %p1962_p0 }
 0x235   : > { %1730 = vmatpush.msk.msra.mxu2 %vm2277_vm2, %v589_v50  ;;  %1736 = vmatpush.msk.msra.mxu3 %vm2281_vm3, %v587_v51 }
 0x236   : > { %p1965_p3 = pnand %p1964_p2, %p1960_p13 }
 0x23b   : > { %v548_v53 = vpop.permute.xlu2 %547 }
 0x243   : > { %v582_v55 = vpop.permute.xlu1 %581  ;;  %v546_v56 = vpop.permute.xlu2 %545 }
 0x244   : > { %v578_v57 = vpop.permute.xlu0 %577 }
 0x245   : > { %v588_v60 = vsel %vm585_vm1, %v582_v55, %v578_v57  ;;  %v586_v61 = vsel %vm585_vm1, %v578_v57, %v582_v55  ;;  %vm747_vm1 = vcmp.lt.s32.totalorder %v745_v0, 16 }
 0x246   : > { %1731 = vmatpush.msk.msra.mxu2 %vm2277_vm2, %v588_v60  ;;  %1737 = vmatpush.msk.msra.mxu3 %vm2281_vm3, %v586_v61  ;;  %vm855_vm2 = vcmp.ge.s32.totalorder %v2237_v34, 0  ;;  %vm856_vm3 = vcmp.lt.s32.totalorder %v2237_v34, 16  ;;  %vm2337_vm4 = vmand %vm746_vm0, %vm747_vm1  ;;  %v1850_v61 = vld [vmem:[%s2828_s5 + $0x100] sm:$0xff] }
 0x247   : > { %1732 = vmatmul.msk.f32.vlgmr.msra.gmra.mxu2 %vm604_vm9, %v1726_v58  ;;  %1738 = vmatmul.msk.f32.vlgmr.msra.gmra.mxu3 %vm604_vm9, %v1726_v58  ;;  %vm2343_vm5 = vmand %vm855_vm2, %vm856_vm3  ;;  %vm867_vm3 = vcmp.lt.s32.totalorder %v2272_v44, 1  ;;  %v570_v58 = vld [vmem:[%s2828_s5 + $0x8] sm:$0xff] }
 0x248   : > { %vm749_vm7 = vmand %vm2258_vm15, %vm2337_vm4 }
 0x249   : > { %vm964_vm0 = vmand %vm2343_vm5, %vm2240_vm8  ;;  %v763_v16 = vsel %vm749_vm7, 1, %v2005_v1  ;;  %vm1282_vm8 = vcmp.lt.s32.totalorder %v2272_v44, 112 }
 0x24a   : > { %v764_v19 = vperm.slane %v763_v16, 0  ;;  %v765_v20 = vperm.slane %v763_v16, 1  ;;  %v965_v21 = vsel %vm964_vm0, 1, %v2005_v1  ;;  %vm858_vm15 = vmand %vm2343_vm5, %vm2293_vm6 }
 0x24b   : > { %v755_v2 = vpop.permute.xlu1 %754  ;;  %v753_v3 = vpop.permute.xlu2 %752  ;;  %v966_v22 = vperm.slane %v965_v21, 0  ;;  %v967_v23 = vperm.slane %v965_v21, 1  ;;  %v872_v34 = vsel %vm858_vm15, 1, %v2005_v1  ;;  %vm1057_vm15 = vmand %vm2343_vm5, %vm2337_vm4  ;;  %vm1066_vm5 = vcmp.lt.s32.totalorder %v2272_v44, 127 }
 0x24c   : > { %v552_v6 = vpop.permute.xlu0 %551  ;;  %v873_v45 = vperm.slane %v872_v34, 0  ;;  %v874_v46 = vperm.slane %v872_v34, 1  ;;  %v1071_v51 = vsel %vm1057_vm15, 1, %v2005_v1 }
 0x24d   : > { %v559_v8 = vsel %vm555_vm10, %v552_v6, %v548_v53  ;;  %v557_v9 = vsel %vm555_vm10, %v548_v53, %v552_v6  ;;  %vm2393_vm1 = vcmp.eq.s32.totalorder %v966_v22, 1  ;;  %vm2397_vm2 = vcmp.eq.s32.totalorder %v967_v23, 1  ;;  %v571_v6 = vld [vmem:[%s2828_s5 + $0x10] sm:$0xff] }
 0x24e   : > { %1742 = vmatpush.msk.msrb.mxu2 %vm2316_vm13, %v559_v8  ;;  %1748 = vmatpush.msk.msrb.mxu3 %vm2320_vm14, %v557_v9  ;;  %vm2425_vm7 = vcmp.eq.s32.totalorder %v873_v45, 1  ;;  %vm2429_vm0 = vcmp.eq.s32.totalorder %v874_v46, 1  ;;  %v1072_v53 = vperm.slane %v1071_v51, 0  ;;  %v1073_v55 = vperm.slane %v1071_v51, 1  ;;  %v1757_v9 = vld [vmem:[%s2828_s5 + $0x58] sm:$0xff]  ;;  %v1771_v45 = vld [vmem:[%s2828_s5 + $0x68] sm:$0xff] }
 0x24f   : > { %1733 = vmatmul.msk.f32.gmra.mxu2 %vm604_vm9, %v1727_v7  ;;  %1739 = vmatmul.msk.f32.gmra.mxu3 %vm604_vm9, %v1727_v7  ;;  %v1287_v23 = vsel %vm1273_vm12, 1, %v2005_v1  ;;  %v1818_v51 = vld [vmem:[%s2828_s5 + $0xc0] sm:$0xff] }
 0x250   : > { %v1288_v36 = vperm.slane %v1287_v23, 0 }
 0x253   : > { %v2351_v12 = vpop.permute.xlu1 %859  ;;  %v751_v13 = vpop.permute.xlu2 %750 }
 0x254   : > { %v550_v14 = vpop.permute.xlu0 %549 }
 0x255   : > { %v558_v17 = vsel %vm555_vm10, %v550_v14, %v546_v56  ;;  %v556_v18 = vsel %vm555_vm10, %v546_v56, %v550_v14  ;;  %vm2376_vm10 = vcmp.eq.s32.totalorder %v764_v19, 1 }
 0x256   : > { %1743 = vmatpush.msk.msrb.mxu2 %vm2316_vm13, %v558_v17  ;;  %1749 = vmatpush.msk.msrb.mxu3 %vm2320_vm14, %v556_v18  ;;  %vm2380_vm13 = vcmp.eq.s32.totalorder %v765_v20, 1  ;;  %vm758_vm14 = vcmp.lt.s32.totalorder %v2272_v44, 15  ;;  %v572_v18 = vld [vmem:[%s2828_s5 + $0x18] sm:$0xff] }
 0x257   : > { %1734 = vmatmul.msk.f32.gmra.mxu2 %vm604_vm9, %v1728_v15  ;;  %1740 = vmatmul.msk.f32.gmra.mxu3 %vm604_vm9, %v1728_v15  ;;  %v761_v41 = vsel %vm758_vm14, %v755_v2, %v751_v13  ;;  %v759_v42 = vsel %vm758_vm14, %v751_v13, %v755_v2 }
 0x25b   : > { %v1065_v24 = vpop.permute.xlu1 %1064  ;;  %v866_v25 = vpop.permute.xlu2 %865 }
 0x25c   : > { %v757_v31 = vpop.permute.xlu0 %756 }
 0x25d   : > { %v762_v35 = vsel %vm758_vm14, %v757_v31, %v753_v3  ;;  %v760_v38 = vsel %vm758_vm14, %v753_v3, %v757_v31  ;;  %v1756_v3 = vld [vmem:[%s2828_s5 + $0x50] sm:$0xff]  ;;  %vm1167_vm14 = vmand %vm2244_vm11, %vm2293_vm6 }
 0x25e   : > { %1758 = vmatpush.msk.msrb.mxu0 %vm2376_vm10, %v762_v35  ;;  %1764 = vmatpush.msk.msrb.mxu1 %vm2380_vm13, %v760_v38  ;;  %v1181_v7 = vsel %vm1167_vm14, 1, %v2005_v1  ;;  %vm1379_vm6 = vmand %vm2244_vm11, %vm2337_vm4  ;;  %vm1388_vm4 = vcmp.lt.s32.totalorder %v2272_v44, 111 }
 0x25f   : > { %1735 = vmatmul.msk.f32.gmra.mxu2 %vm604_vm9, %v1729_v33  ;;  %1741 = vmatmul.msk.f32.gmra.mxu3 %vm604_vm9, %v1729_v33  ;;  %v1182_v11 = vperm.slane %v1181_v7, 0  ;;  %v1393_v17 = vsel %vm1379_vm6, 1, %v2005_v1  ;;  %v1289_v1 = vperm.slane %v1287_v23, 1 }
 0x260   : > { %1759 = vmatpush.msk.msrb.mxu0 %vm2376_vm10, %v761_v41  ;;  %1765 = vmatpush.msk.msrb.mxu1 %vm2380_vm13, %v759_v42  ;;  %vm2466_vm10 = vcmp.eq.s32.totalorder %v1072_v53, 1  ;;  %vm2470_vm13 = vcmp.eq.s32.totalorder %v1073_v55, 1  ;;  %v1394_v21 = vperm.slane %v1393_v17, 0  ;;  %v1395_v22 = vperm.slane %v1393_v17, 1  ;;  %v1787_v42 = vld [vmem:[%s2828_s5 + $0x88] sm:$0xff]  ;;  %v1487_v17 = vld [vmem:[%s2829_s6 + $0x10] sm:$0xff] }
 0x261   : > { %1760 = vmatmul.msk.f32.vlgmr.msrb.gmra.mxu0 %vm604_vm9, %v1754_v43  ;;  %1766 = vmatmul.msk.f32.vlgmr.msrb.gmra.mxu1 %vm604_vm9, %v1754_v43  ;;  %v1819_v53 = vld [vmem:[%s2828_s5 + $0xc8] sm:$0xff] }
 0x262   : > { %1790 = vmatpush.msk.msra.mxu0 %vm2393_vm1, %v2195_v29  ;;  %1796 = vmatpush.msk.msra.mxu1 %vm2397_vm2, %v2204_v32  ;;  %vm2556_vm11 = vcmp.eq.s32.totalorder %v1394_v21, 1  ;;  %vm2560_vm12 = vcmp.eq.s32.totalorder %v1395_v22, 1  ;;  %v1788_v29 = vld [vmem:[%s2828_s5 + $0x90] sm:$0xff]  ;;  %v1803_v55 = vld [vmem:[%s2828_s5 + $0xa8] sm:$0xff] }
 0x263   : > { %v1061_v47 = vpop.permute.xlu2 %1060  ;;  %1501 = vperm.xlu2 %1936, %v1487_v17  }
 0x264   : > { %1791 = vmatpush.msk.msra.mxu0 %vm2393_vm1, %v2191_v27  ;;  %1797 = vmatpush.msk.msra.mxu1 %vm2397_vm2, %v2193_v28  ;;  %v862_v48 = vpop.permute.xlu0 %861  ;;  %v569_v27 = vld [vmem:[%s2828_s5] sm:$0xff]  ;;  %v1171_v28 = vpop.permute.xlu1 %1170  ;;  %v1068_v63 = vsel %vm1066_vm5, %v1061_v47, %v1065_v24  ;;  %v1070_v0 = vsel %vm1066_vm5, %v1065_v24, %v1061_v47  ;;  %vm2520_vm1 = vcmp.eq.s32.totalorder %v1182_v11, 1 }
 0x265   : > { %v869_v49 = vsel %vm867_vm3, %v862_v48, %v866_v25  ;;  %v871_v50 = vsel %vm867_vm3, %v866_v25, %v862_v48 }
 0x266   : > { %1774 = vmatpush.msk.msra.mxu2 %vm2425_vm7, %v871_v50  ;;  %1780 = vmatpush.msk.msra.mxu3 %vm2429_vm0, %v869_v49  ;;  %v1789_v50 = vld [vmem:[%s2828_s5 + $0x98] sm:$0xff] }
 0x267   : > { %1744 = vmatmul.msk.f32.vlgmr.msrb.gmra.mxu2 %vm604_vm9, %v569_v27  ;;  %1750 = vmatmul.msk.f32.vlgmr.msrb.gmra.mxu3 %vm604_vm9, %v569_v27  ;;  %v1772_v27 = vld [vmem:[%s2828_s5 + $0x70] sm:$0xff] }
 0x269   : > { %1761 = vmatmul.msk.f32.gmra.mxu0 %vm604_vm9, %v1755_v52  ;;  %1767 = vmatmul.msk.f32.gmra.mxu1 %vm604_vm9, %v1755_v52  ;;  %v1802_v52 = vld [vmem:[%s2828_s5 + $0xa0] sm:$0xff] }
 0x26b   : > { %v1063_v56 = vpop.permute.xlu2 %1062 }
 0x26c   : > { %v864_v57 = vpop.permute.xlu0 %863  ;;  %v1173_v2 = vpop.permute.xlu1 %1172 }
 0x26d   : > { %v868_v59 = vsel %vm867_vm3, %v2351_v12, %v864_v57  ;;  %v870_v60 = vsel %vm867_vm3, %v864_v57, %v2351_v12  ;;  %v1183_v12 = vperm.slane %v1181_v7, 1  ;;  %vm1176_vm3 = vcmp.lt.s32.totalorder %v2272_v44, 113  ;;  %v1773_v44 = vld [vmem:[%s2828_s5 + $0x78] sm:$0xff]  ;;  %v1804_v57 = vld [vmem:[%s2828_s5 + $0xb0] sm:$0xff] }
 0x26e   : > { %1775 = vmatpush.msk.msra.mxu2 %vm2425_vm7, %v870_v60  ;;  %1781 = vmatpush.msk.msra.mxu3 %vm2429_vm0, %v868_v59  ;;  %vm1290_vm7 = vcmp.eq.s32.totalorder %v1288_v36, 1  ;;  %vm1291_vm0 = vcmp.eq.s32.totalorder %v1289_v1, 1  ;;  %v1485_v59 = vld [vmem:[%s2829_s6] sm:$0xff]  ;;  %v1805_v60 = vld [vmem:[%s2828_s5 + $0xb8] sm:$0xff] }
 0x26f   : > { %1745 = vmatmul.msk.f32.gmra.mxu2 %vm604_vm9, %v570_v58  ;;  %1751 = vmatmul.msk.f32.gmra.mxu3 %vm604_vm9, %v570_v58  ;;  %vm2524_vm2 = vcmp.eq.s32.totalorder %v1183_v12, 1  ;;  %v1821_v58 = vld [vmem:[%s2828_s5 + $0xd8] sm:$0xff] }
 0x270   : > { %1806 = vmatpush.msk.msrb.mxu2 %vm2466_vm10, %v1068_v63  ;;  %1812 = vmatpush.msk.msrb.mxu3 %vm2470_vm13, %v1070_v0  ;;  %v1851_v63 = vld [vmem:[%s2828_s5 + $0x108] sm:$0xff]  ;;  %v1837_v12 = vld [vmem:[%s2828_s5 + $0xf8] sm:$0xff] }
 0x271   : > { %1762 = vmatmul.msk.f32.gmra.mxu0 %vm604_vm9, %v1756_v3  ;;  %1768 = vmatmul.msk.f32.gmra.mxu1 %vm604_vm9, %v1756_v3  ;;  %v1835_v3 = vld [vmem:[%s2828_s5 + $0xe8] sm:$0xff] }
 0x272   : > { %1491 = vperm.xlu1 %1935, %v1485_v59  }
 0x273   : > { %v1169_v4 = vpop.permute.xlu2 %1168 }
 0x274   : > { %v1059_v5 = vpop.permute.xlu0 %1058  ;;  %v1275_v13 = vpop.permute.xlu1 %1274  ;;  %v1177_v24 = vsel %vm1176_vm3, %v1169_v4, %v1173_v2  ;;  %v1179_v25 = vsel %vm1176_vm3, %v1173_v2, %v1169_v4  ;;  %v1488_v4 = vld [vmem:[%s2829_s6 + $0x18] sm:$0xff] }
 0x275   : > { %v1067_v8 = vsel %vm1066_vm5, %v1059_v5, %v1063_v56  ;;  %v1069_v54 = vsel %vm1066_vm5, %v1063_v56, %v1059_v5  ;;  %v1820_v56 = vld [vmem:[%s2828_s5 + $0xd0] sm:$0xff] }
 0x276   : > { %1807 = vmatpush.msk.msrb.mxu2 %vm2466_vm10, %v1067_v8  ;;  %1813 = vmatpush.msk.msrb.mxu3 %vm2470_vm13, %v1069_v54  ;;  %v1852_v5 = vld [vmem:[%s2828_s5 + $0x110] sm:$0xff]  ;;  %v1853_v54 = vld [vmem:[%s2828_s5 + $0x118] sm:$0xff] }
 0x277   : > { %1746 = vmatmul.msk.f32.gmra.mxu2 %vm604_vm9, %v571_v6  ;;  %1752 = vmatmul.msk.f32.gmra.mxu3 %vm604_vm9, %v571_v6  ;;  %v1836_v8 = vld [vmem:[%s2828_s5 + $0xf0] sm:$0xff] }
 0x279   : > { %1763 = vmatmul.msk.f32.gmra.mxu0 %vm604_vm9, %v1757_v9  ;;  %1769 = vmatmul.msk.f32.gmra.mxu1 %vm604_vm9, %v1757_v9 }
 0x27a   : > { %1506 = vperm.xlu1 %1935, %v1488_v4  }
 0x27b   : > { %v1281_v14 = vpop.permute.xlu2 %1280 }
 0x27c   : > { %v1175_v10 = vpop.permute.xlu0 %1174  ;;  %v1387_v31 = vpop.permute.xlu1 %1386 }
 0x27d   : > { %v1178_v19 = vsel %vm1176_vm3, %v1171_v28, %v1175_v10  ;;  %v1180_v20 = vsel %vm1176_vm3, %v1175_v10, %v1171_v28 }
 0x27e   : > { %1822 = vmatpush.msk.msrb.mxu0 %vm2520_vm1, %v1178_v19  ;;  %1828 = vmatpush.msk.msrb.mxu1 %vm2524_vm2, %v1180_v20 }
 0x27f   : > { %1747 = vmatmul.msk.f32.gmra.mxu2 %vm604_vm9, %v572_v18  ;;  %1753 = vmatmul.msk.f32.gmra.mxu3 %vm604_vm9, %v572_v18 }
 0x280   : > { %1823 = vmatpush.msk.msrb.mxu0 %vm2520_vm1, %v1177_v24  ;;  %1829 = vmatpush.msk.msrb.mxu1 %vm2524_vm2, %v1179_v25 }
 0x281   : > { %1792 = vmatmul.msk.f32.vlgmr.msra.gmra.mxu0 %vm604_vm9, %v1786_v26  ;;  %1798 = vmatmul.msk.f32.vlgmr.msra.gmra.mxu1 %vm604_vm9, %v1786_v26 }
 0x283   : > { %v1383_v33 = vpop.permute.xlu2 %1382 }
 0x284   : > { %v1390_v34 = vsel %vm1388_vm4, %v1383_v33, %v1387_v31  ;;  %v1392_v35 = vsel %vm1388_vm4, %v1387_v31, %v1383_v33  ;;  %v1277_v38 = vpop.permute.xlu0 %1276 }
 0x285   : > { %v1284_v40 = vsel %vm1282_vm8, %v1277_v38, %v1281_v14  ;;  %v1286_v41 = vsel %vm1282_vm8, %v1281_v14, %v1277_v38  ;;  %1854 = vmatpush.msk.msra.mxu0 %vm2556_vm11, %v1390_v34  ;;  %1860 = vmatpush.msk.msra.mxu1 %vm2560_vm12, %v1392_v35 }
 0x287   : > { %1776 = vmatmul.msk.f32.vlgmr.msra.gmra.mxu2 %vm604_vm9, %v1770_v39  ;;  %1782 = vmatmul.msk.f32.vlgmr.msra.gmra.mxu3 %vm604_vm9, %v1770_v39 }
 0x288   : > { %1838 = vmatpush.msk.msra.mxu2 %vm1290_vm7, %v1284_v40  ;;  %1844 = vmatpush.msk.msra.mxu3 %vm1291_vm0, %v1286_v41 }
 0x289   : > { %1793 = vmatmul.msk.f32.gmra.mxu0 %vm604_vm9, %v1787_v42  ;;  %1799 = vmatmul.msk.f32.gmra.mxu1 %vm604_vm9, %v1787_v42 }
 0x28b   : > { %v1385_v32 = vpop.permute.xlu2 %1384 }
 0x28c   : > { %v1279_v43 = vpop.permute.xlu0 %1278 }
 0x28d   : > { %v1283_v46 = vsel %vm1282_vm8, %v1275_v13, %v1279_v43  ;;  %v1285_v47 = vsel %vm1282_vm8, %v1279_v43, %v1275_v13 }
 0x28e   : > { %1839 = vmatpush.msk.msra.mxu2 %vm1290_vm7, %v1283_v46  ;;  %1845 = vmatpush.msk.msra.mxu3 %vm1291_vm0, %v1285_v47 }
 0x28f   : > { %1777 = vmatmul.msk.f32.gmra.mxu2 %vm604_vm9, %v1771_v45  ;;  %1783 = vmatmul.msk.f32.gmra.mxu3 %vm604_vm9, %v1771_v45 }
 0x291   : > { %1794 = vmatmul.msk.f32.gmra.mxu0 %vm604_vm9, %v1788_v29  ;;  %1800 = vmatmul.msk.f32.gmra.mxu1 %vm604_vm9, %v1788_v29 }
 0x294   : > { %v1381_v48 = vpop.permute.xlu0 %1380 }
 0x295   : > { %v1389_v28 = vsel %vm1388_vm4, %v1381_v48, %v1385_v32  ;;  %v1391_v49 = vsel %vm1388_vm4, %v1385_v32, %v1381_v48 }
 0x296   : > { %1855 = vmatpush.msk.msra.mxu0 %vm2556_vm11, %v1389_v28  ;;  %1861 = vmatpush.msk.msra.mxu1 %vm2560_vm12, %v1391_v49 }
 0x297   : > { %1778 = vmatmul.msk.f32.gmra.mxu2 %vm604_vm9, %v1772_v27  ;;  %1784 = vmatmul.msk.f32.gmra.mxu3 %vm604_vm9, %v1772_v27 }
 0x299   : > { %1795 = vmatmul.msk.f32.gmra.mxu0 %vm604_vm9, %v1789_v50  ;;  %1801 = vmatmul.msk.f32.gmra.mxu1 %vm604_vm9, %v1789_v50 }
 0x29f   : > { %1779 = vmatmul.msk.f32.gmra.mxu2 %vm604_vm9, %v1773_v44  ;;  %1785 = vmatmul.msk.f32.gmra.mxu3 %vm604_vm9, %v1773_v44 }
 0x2a1   : > { %1824 = vmatmul.msk.f32.vlgmr.msrb.gmra.mxu0 %vm604_vm9, %v1818_v51  ;;  %1830 = vmatmul.msk.f32.vlgmr.msrb.gmra.mxu1 %vm604_vm9, %v1818_v51 }
 0x2a7   : > { %1808 = vmatmul.msk.f32.vlgmr.msrb.gmra.mxu2 %vm604_vm9, %v1802_v52  ;;  %1814 = vmatmul.msk.f32.vlgmr.msrb.gmra.mxu3 %vm604_vm9, %v1802_v52 }
 0x2a9   : > { %1825 = vmatmul.msk.f32.gmra.mxu0 %vm604_vm9, %v1819_v53  ;;  %1831 = vmatmul.msk.f32.gmra.mxu1 %vm604_vm9, %v1819_v53 }
 0x2af   : > { %1809 = vmatmul.msk.f32.gmra.mxu2 %vm604_vm9, %v1803_v55  ;;  %1815 = vmatmul.msk.f32.gmra.mxu3 %vm604_vm9, %v1803_v55 }
 0x2b1   : > { %1826 = vmatmul.msk.f32.gmra.mxu0 %vm604_vm9, %v1820_v56  ;;  %1832 = vmatmul.msk.f32.gmra.mxu1 %vm604_vm9, %v1820_v56 }
 0x2b7   : > { %1810 = vmatmul.msk.f32.gmra.mxu2 %vm604_vm9, %v1804_v57  ;;  %1816 = vmatmul.msk.f32.gmra.mxu3 %vm604_vm9, %v1804_v57 }
 0x2b9   : > { %1827 = vmatmul.msk.f32.gmra.mxu0 %vm604_vm9, %v1821_v58  ;;  %1833 = vmatmul.msk.f32.gmra.mxu1 %vm604_vm9, %v1821_v58 }
 0x2bf   : > { %1811 = vmatmul.msk.f32.gmra.mxu2 %vm604_vm9, %v1805_v60  ;;  %1817 = vmatmul.msk.f32.gmra.mxu3 %vm604_vm9, %v1805_v60 }
 0x2c1   : > { %1856 = vmatmul.msk.f32.vlgmr.msra.gmra.mxu0 %vm604_vm9, %v1850_v61  ;;  %1862 = vmatmul.msk.f32.vlgmr.msra.gmra.mxu1 %vm604_vm9, %v1850_v61 }
 0x2c7   : > { %1840 = vmatmul.msk.f32.vlgmr.msra.gmra.mxu2 %vm604_vm9, %v1834_v62  ;;  %1846 = vmatmul.msk.f32.vlgmr.msra.gmra.mxu3 %vm604_vm9, %v1834_v62 }
 0x2c9   : > { %1857 = vmatmul.msk.f32.gmra.mxu0 %vm604_vm9, %v1851_v63  ;;  %1863 = vmatmul.msk.f32.gmra.mxu1 %vm604_vm9, %v1851_v63 }
 0x2ca   : > { %v634_v0 = vpop.f32.mrf.mxu2  ;;  %v663_v2 = vpop.f32.mrf.mxu3 }
 0x2cf   : > { %1841 = vmatmul.msk.f32.gmra.mxu2 %vm604_vm9, %v1835_v3  ;;  %1847 = vmatmul.msk.f32.gmra.mxu3 %vm604_vm9, %v1835_v3 }
 0x2d1   : > { %1858 = vmatmul.msk.f32.gmra.mxu0 %vm604_vm9, %v1852_v5  ;;  %1864 = vmatmul.msk.f32.gmra.mxu1 %vm604_vm9, %v1852_v5 }
 0x2d2   : > { %v637_v6 = vpop.f32.mrf.mxu2  ;;  %v666_v7 = vpop.f32.mrf.mxu3 }
 0x2d7   : > { %1842 = vmatmul.msk.f32.gmra.mxu2 %vm604_vm9, %v1836_v8  ;;  %1848 = vmatmul.msk.f32.gmra.mxu3 %vm604_vm9, %v1836_v8 }
 0x2d9   : > { %1859 = vmatmul.msk.f32.gmra.mxu0 %vm604_vm9, %v1853_v54  ;;  %1865 = vmatmul.msk.f32.gmra.mxu1 %vm604_vm9, %v1853_v54 }
 0x2da   : > { %v640_v9 = vpop.f32.mrf.mxu2  ;;  %v669_v11 = vpop.f32.mrf.mxu3 }
 0x2de   : > { %v806_v13 = vpop.f32.mrf.mxu0  ;;  %v835_v14 = vpop.f32.mrf.mxu1 }
 0x2df   : > { %1843 = vmatmul.msk.f32.gmra.mxu2 %vm604_vm9, %v1837_v12  ;;  %1849 = vmatmul.msk.f32.gmra.mxu3 %vm604_vm9, %v1837_v12 }
 0x2e2   : > { %v643_v15 = vpop.f32.mrf.mxu2  ;;  %v672_v16 = vpop.f32.mrf.mxu3 }
 0x2e6   : > { %v809_v10 = vpop.f32.mrf.mxu0  ;;  %v838_v18 = vpop.f32.mrf.mxu1 }
 0x2ea   : > { %v704_v19 = vpop.f32.mrf.mxu2  ;;  %v733_v20 = vpop.f32.mrf.mxu3 }
 0x2eb   : > { %v705_v21 = vadd.f32 %v704_v19, %v634_v0  ;;  %v734_v22 = vadd.f32 %v733_v20, %v663_v2 }
 0x2ed   : > { %v847_v23 = vadd.f32 %v806_v13, %v705_v21  ;;  %v848_v24 = vadd.f32 %v835_v14, %v734_v22 }
 0x2ee   : > { %v812_v25 = vpop.f32.mrf.mxu0  ;;  %v841_v26 = vpop.f32.mrf.mxu1 }
 0x2f2   : > { %v707_v36 = vpop.f32.mrf.mxu2  ;;  %v736_v1 = vpop.f32.mrf.mxu3 }
 0x2f3   : > { %v708_v37 = vadd.f32 %v707_v36, %v637_v6  ;;  %v737_v30 = vadd.f32 %v736_v1, %v666_v7 }
 0x2f5   : > { %v849_v31 = vadd.f32 %v809_v10, %v708_v37  ;;  %v850_v33 = vadd.f32 %v838_v18, %v737_v30 }
 0x2f6   : > { %v815_v34 = vpop.f32.mrf.mxu0  ;;  %v844_v35 = vpop.f32.mrf.mxu1 }
 0x2fa   : > { %v710_v38 = vpop.f32.mrf.mxu2  ;;  %v739_v39 = vpop.f32.mrf.mxu3 }
 0x2fb   : > { %v711_v40 = vadd.f32 %v710_v38, %v640_v9  ;;  %v740_v41 = vadd.f32 %v739_v39, %v669_v11  ;;  %v1492_v39 = vpop.permute.xlu1 %1491 }
 0x2fd   : > { %v2712_v42 = vadd.f32 %v812_v25, %v711_v40  ;;  %v2714_v43 = vadd.f32 %v841_v26, %v740_v41 }
 0x2fe   : > { %v1008_v45 = vpop.f32.mrf.mxu0  ;;  %v1037_v46 = vpop.f32.mrf.mxu1 }
 0x302   : > { %v713_v47 = vpop.f32.mrf.mxu2  ;;  %v742_v29 = vpop.f32.mrf.mxu3 }
 0x303   : > { %v714_v32 = vadd.f32 %v713_v47, %v643_v15  ;;  %v743_v48 = vadd.f32 %v742_v29, %v672_v16 }
 0x305   : > { %v2716_v27 = vadd.f32 %v815_v34, %v714_v32  ;;  %v2718_v28 = vadd.f32 %v844_v35, %v743_v48 }
 0x306   : > { %v1011_v49 = vpop.f32.mrf.mxu0  ;;  %v1040_v50 = vpop.f32.mrf.mxu1 }
 0x30a   : > { %v915_v44 = vpop.f32.mrf.mxu2  ;;  %v944_v51 = vpop.f32.mrf.mxu3 }
 0x30b   : > { %v956_v14 = vadd.f32 %v915_v44, %v847_v23  ;;  %v957_v15 = vadd.f32 %v944_v51, %v848_v24 }
 0x30d   : > { %v1049_v10 = vadd.f32 %v1008_v45, %v956_v14  ;;  %v1050_v18 = vadd.f32 %v1037_v46, %v957_v15 }
 0x30e   : > { %v2720_v52 = vpop.f32.mrf.mxu0  ;;  %v2722_v53 = vpop.f32.mrf.mxu1 }
 0x312   : > { %v918_v55 = vpop.f32.mrf.mxu2  ;;  %v947_v56 = vpop.f32.mrf.mxu3 }
 0x313   : > { %v958_v25 = vadd.f32 %v918_v55, %v849_v31  ;;  %v959_v26 = vadd.f32 %v947_v56, %v850_v33 }
 0x315   : > { %v1051_v37 = vadd.f32 %v1011_v49, %v958_v25  ;;  %v1052_v24 = vadd.f32 %v1040_v50, %v959_v26 }
 0x316   : > { %v2724_v57 = vpop.f32.mrf.mxu0  ;;  %v2726_v58 = vpop.f32.mrf.mxu1 }
 0x31a   : > { %v921_v59 = vpop.f32.mrf.mxu2  ;;  %v950_v60 = vpop.f32.mrf.mxu3 }
 0x31b   : > { %v960_v31 = vadd.f32 %v921_v59, %v2712_v42  ;;  %v961_v33 = vadd.f32 %v950_v60, %v2714_v43 }
 0x31d   : > { %v1053_v55 = vadd.f32 %v2720_v52, %v960_v31  ;;  %v1054_v42 = vadd.f32 %v2722_v53, %v961_v33 }
 0x31e   : > { %v1224_v61 = vpop.f32.mrf.mxu0  ;;  %v1253_v62 = vpop.f32.mrf.mxu1 }
 0x322   : > { %v2728_v63 = vpop.f32.mrf.mxu2  ;;  %v2730_v0 = vpop.f32.mrf.mxu3 }
 0x323   : > { %v963_v52 = vadd.f32 %v2730_v0, %v2718_v28 }
 0x326   : > { %v1227_v2 = vpop.f32.mrf.mxu0  ;;  %v1256_v3 = vpop.f32.mrf.mxu1 }
 0x32a   : > { %v1114_v4 = vpop.f32.mrf.mxu2  ;;  %v1143_v5 = vpop.f32.mrf.mxu3 }
 0x32b   : > { %v1155_v21 = vadd.f32 %v1114_v4, %v1049_v10  ;;  %v1156_v22 = vadd.f32 %v1143_v5, %v1050_v18  ;;  %v1497_v5 = vpop.permute.xlu0 %1496 }
 0x32d   : > { %v1265_v36 = vadd.f32 %v1224_v61, %v1155_v21  ;;  %v1266_v1 = vadd.f32 %v1253_v62, %v1156_v22  ;;  %v1056_v21 = vadd.f32 %v2726_v58, %v963_v52 }
 0x32e   : > { %v2732_v6 = vpop.f32.mrf.mxu0  ;;  %v2734_v7 = vpop.f32.mrf.mxu1 }
 0x332   : > { %v1117_v8 = vpop.f32.mrf.mxu2  ;;  %v1146_v54 = vpop.f32.mrf.mxu3 }
 0x333   : > { %v1157_v38 = vadd.f32 %v1117_v8, %v1051_v37  ;;  %v1158_v40 = vadd.f32 %v1146_v54, %v1052_v24  ;;  %v962_v8 = vadd.f32 %v2728_v63, %v2716_v27 }
 0x335   : > { %v1267_v48 = vadd.f32 %v1227_v2, %v1157_v38  ;;  %v1268_v49 = vadd.f32 %v1256_v3, %v1158_v40 }
 0x336   : > { %v2736_v9 = vpop.f32.mrf.mxu0  ;;  %v2738_v11 = vpop.f32.mrf.mxu1 }
 0x33a   : > { %v1120_v12 = vpop.f32.mrf.mxu2  ;;  %v1149_v13 = vpop.f32.mrf.mxu3 }
 0x33b   : > { %v1159_v62 = vadd.f32 %v1120_v12, %v1053_v55  ;;  %v1160_v2 = vadd.f32 %v1149_v13, %v1054_v42 }
 0x33d   : > { %v1269_v10 = vadd.f32 %v2732_v6, %v1159_v62  ;;  %v1270_v18 = vadd.f32 %v2734_v7, %v1160_v2  ;;  %v1502_v7 = vpop.permute.xlu2 %1501 }
 0x33e   : > { %v1436_v19 = vpop.f32.mrf.mxu0  ;;  %v1465_v20 = vpop.f32.mrf.mxu1 }
 0x342   : > { %v2740_v16 = vpop.f32.mrf.mxu2  ;;  %v2742_v17 = vpop.f32.mrf.mxu3 }
 0x343   : > { %v1162_v25 = vadd.f32 %v2742_v17, %v1056_v21 }
 0x345   : > { %v1272_v37 = vadd.f32 %v2738_v11, %v1162_v25  ;;  %v1507_v11 = vpop.permute.xlu1 %1506 }
 0x346   : > { %v1439_v46 = vpop.f32.mrf.mxu0  ;;  %v1468_v47 = vpop.f32.mrf.mxu1 }
 0x34a   : > { %v1330_v30 = vpop.f32.mrf.mxu2  ;;  %v1359_v23 = vpop.f32.mrf.mxu3 }
 0x34b   : > { %v1371_v34 = vadd.f32 %v1330_v30, %v1265_v36  ;;  %v1372_v35 = vadd.f32 %v1359_v23, %v1266_v1 }
 0x34d   : > { %v1477_v41 = vadd.f32 %v1436_v19, %v1371_v34  ;;  %v1478_v45 = vadd.f32 %v1465_v20, %v1372_v35  ;;  %v1055_v20 = vadd.f32 %v2724_v57, %v962_v8 }
 0x34e   : > { %v1442_v53 = vpop.f32.mrf.mxu0  ;;  %v1471_v15 = vpop.f32.mrf.mxu1 }
 0x34f   : > { %v1509_v29 = vadd.f32 %v1492_v39, %v1477_v41  ;;  %v1510_v32 = vadd.f32 %v1492_v39, %v1478_v45  ;;  %v1161_v6 = vadd.f32 %v2740_v16, %v1055_v20 }
 0x351   : > { %1517 = vst [vmem:[%s2749_s27] sm:$0xff] %v1509_v29  ;;  %v1525_v50 = vadd.f32 %v1510_v32, %v1509_v29  ;;  %v1542_v44 = vmul.f32 %v1509_v29, %v1509_v29  ;;  %v1543_v51 = vmul.f32 %v1510_v32, %v1510_v32  ;;  %v1271_v58 = vadd.f32 %v2736_v9, %v1161_v6 }
 0x352   : > { %1518 = vst [vmem:[%s2749_s27 + $0x8] sm:$0xff] %v1510_v32  ;;  %v1333_v56 = vpop.f32.mrf.mxu2  ;;  %v1362_v61 = vpop.f32.mrf.mxu3 }
 0x353   : > { %v1373_v43 = vadd.f32 %v1333_v56, %v1267_v48  ;;  %v1374_v59 = vadd.f32 %v1362_v61, %v1268_v49  ;;  %1526 = vadd.xlane.f32.xlu0 %v1525_v50  ;;  %v1550_v60 = vadd.f32 %v1543_v51, %v1542_v44 }
 0x355   : > { %v1479_v3 = vadd.f32 %v1439_v46, %v1373_v43  ;;  %v1480_v4 = vadd.f32 %v1468_v47, %v1374_v59 }
 0x356   : > { %v1445_v23 = vpop.f32.mrf.mxu0  ;;  %v1474_v24 = vpop.f32.mrf.mxu1 }
 0x357   : > { %v1511_v54 = vadd.f32 %v1497_v5, %v1479_v3  ;;  %v1512_v14 = vadd.f32 %v1497_v5, %v1480_v4 }
 0x359   : > { %1519 = vst [vmem:[%s2749_s27 + $0x10] sm:$0xff] %v1511_v54  ;;  %v1528_v12 = vadd.f32 %v1512_v14, %v1511_v54  ;;  %v1544_v13 = vmul.f32 %v1511_v54, %v1511_v54  ;;  %v1545_v19 = vmul.f32 %v1512_v14, %v1512_v14 }
 0x35a   : > { %1520 = vst [vmem:[%s2749_s27 + $0x18] sm:$0xff] %v1512_v14  ;;  %v1336_v27 = vpop.f32.mrf.mxu2  ;;  %v1365_v28 = vpop.f32.mrf.mxu3 }
 0x35b   : > { %v1375_v63 = vadd.f32 %v1336_v27, %v1269_v10  ;;  %v1376_v0 = vadd.f32 %v1365_v28, %v1270_v18  ;;  %1551 = vadd.xlane.f32.xlu0 %v1550_v60  ;;  %1529 = vadd.xlane.f32.xlu2 %v1528_v12  ;;  %v1553_v22 = vadd.f32 %v1545_v19, %v1544_v13 }
 0x35d   : > { %v1481_v26 = vadd.f32 %v1442_v53, %v1375_v63  ;;  %v1482_v36 = vadd.f32 %v1471_v15, %v1376_v0 }
 0x35f   : > { %v1513_v57 = vadd.f32 %v1502_v7, %v1481_v26  ;;  %v1514_v1 = vadd.f32 %v1502_v7, %v1482_v36 }
 0x361   : > { %1521 = vst [vmem:[%s2749_s27 + $0x20] sm:$0xff] %v1513_v57  ;;  %v1531_v30 = vadd.f32 %v1514_v1, %v1513_v57  ;;  %v1546_v34 = vmul.f32 %v1513_v57, %v1513_v57  ;;  %v1547_v35 = vmul.f32 %v1514_v1, %v1514_v1 }
 0x362   : > { %1522 = vst [vmem:[%s2749_s27 + $0x28] sm:$0xff] %v1514_v1  ;;  %v1339_v16 = vpop.f32.mrf.mxu2  ;;  %v1368_v38 = vpop.f32.mrf.mxu3 }
 0x363   : > { %v1377_v17 = vadd.f32 %v1339_v16, %v1271_v58  ;;  %v1378_v39 = vadd.f32 %v1368_v38, %v1272_v37  ;;  %1532 = vadd.xlane.f32.xlu1 %v1531_v30  ;;  %v1556_v40 = vadd.f32 %v1547_v35, %v1546_v34 }
 0x365   : > { %v1483_v9 = vadd.f32 %v1445_v23, %v1377_v17  ;;  %v1484_v41 = vadd.f32 %v1474_v24, %v1378_v39 }
 0x367   : > { %v1515_v45 = vadd.f32 %v1507_v11, %v1483_v9  ;;  %v1516_v46 = vadd.f32 %v1507_v11, %v1484_v41 }
 0x369   : > { %1523 = vst [vmem:[%s2749_s27 + $0x30] sm:$0xff] %v1515_v45  ;;  %v1534_v47 = vadd.f32 %v1516_v46, %v1515_v45  ;;  %v1548_v31 = vmul.f32 %v1515_v45, %v1515_v45  ;;  %v1549_v33 = vmul.f32 %v1516_v46, %v1516_v46 }
 0x36a   : > { %1524 = vst [vmem:[%s2749_s27 + $0x38] sm:$0xff] %v1516_v46 }
 0x36b   : > { %1554 = vadd.xlane.f32.xlu1 %v1553_v22  ;;  %1535 = vadd.xlane.f32.xlu2 %v1534_v47  ;;  %v1559_v29 = vadd.f32 %v1549_v33, %v1548_v31 }
 0x36c   : > { %1968 = shalt.err (!%p1965_p3)
}
 0x36d   : > { %s2016_s25 = smov 256   ;;  %s2884_s27 = smov 16   ;;  %1560 = vadd.xlane.f32.xlu0 %v1559_v29  ;;  %vm1537_vm9 = vcmask 7168  }
 0x36e   : > { %1883 = dma.vmem_to_hbm [thread:$0]  (%p2105_p5), %s1590_s17, 1024, %s1592_s22, %s1567_s13, %s2016_s25, %s2016_s25, %s2884_s27  }
 0x36f   : > { %s1871_s0 = sshll.u32 %s2117_s21, 5 }
 0x370   : > { %s350_s29 = scalar_lea.vmem %s2831_s8, %s1871_s0  ;;  %s355_s26 = scalar_lea.vmem %s2832_s9, %s1871_s0 }
 0x373   : > { %1557 = vadd.xlane.f32.xlu2 %v1556_v40 }
 0x3c6   : > { %v1527_v32 = vpop.xlane.xlu0 %1526 }
 0x3c7   : > { %1538 = vst.msk [vmem:[%s350_s29] sm:$0xff] %vm1537_vm9, %v1527_v32 }
 0x3ce   : > { %v1530_v48 = vpop.xlane.xlu2 %1529  ;;  %v1552_v49 = vpop.xlane.xlu0 %1551 }
 0x3cf   : > { %1539 = vst.msk [vmem:[%s350_s29 + $0x8] sm:$0xff] %vm1537_vm9, %v1530_v48 }
 0x3d0   : > { %1562 = vst.msk [vmem:[%s355_s26] sm:$0xff] %vm1537_vm9, %v1552_v49 }
 0x3d6   : > { %v1533_v50 = vpop.xlane.xlu1 %1532 }
 0x3d7   : > { %1540 = vst.msk [vmem:[%s350_s29 + $0x10] sm:$0xff] %vm1537_vm9, %v1533_v50 }
 0x3de   : > { %v1555_v44 = vpop.xlane.xlu1 %1554  ;;  %v1536_v51 = vpop.xlane.xlu2 %1535 }
 0x3df   : > { %1563 = vst.msk [vmem:[%s355_s26 + $0x8] sm:$0xff] %vm1537_vm9, %v1555_v44 }
 0x3e0   : > { %1541 = vst.msk [vmem:[%s350_s29 + $0x18] sm:$0xff] %vm1537_vm9, %v1536_v51  ;;  %v1561_v55 = vpop.xlane.xlu0 %1560 }
 0x3e1   : > { %1565 = vst.msk [vmem:[%s355_s26 + $0x18] sm:$0xff] %vm1537_vm9, %v1561_v55 }
 0x3e6   : > { %v1558_v56 = vpop.xlane.xlu2 %1557 }
 0x3e7   : > { %1564 = vst.msk [vmem:[%s355_s26 + $0x10] sm:$0xff] %vm1537_vm9, %v1558_v56 }
 0x3e8 PF: > { %p1889_p4 = scmp.ge.s32.totalorder %s2003_s12, 2  ;;  %s1612_s0 = sand.u32 1, %s1991_s30  }
 0x3e9   : > { %s1613_s1 = scalar_lea.sflag [#allocation3], %s1612_s0 }
 0x3ea   : > { %p1886_p5 = pnand %p1889_p4, %p2109_p6 }
 0x3ec   : > { %p1887_p7 = pneg %p1886_p5 }
 0x3ee   : > { %1986 = dma.done.wait (%p1887_p7), %s1613_s1, 1024  }
 0x3ef   : > { %1988 = vsyncadd (%p1887_p7), %s1613_s1, 4294966272  ;;  %p20_p8 = scmp.ge.s32.totalorder %s2092_s15, 4   ;;  %s2885_s30 = smov %s1995_s10 }
 0x3f0   : > { %s2886_s10 = smov %s1999_s11  ;;  %s2887_s11 = smov %s2103_s18 }
 0x3f1   : > { %s2888_s12 = smov %s2092_s15  ;;  %22 = sbr.rel (!%p20_p8) target bundleno = 6 (0x6), region = 115 }
 0x3f6   :  { %1635 = vsyncpa [#allocation3], 1 }
 0x3f7   :  { %1637 = vsyncpa [#allocation3 + $0x1], 1 }

</bundles_post_ra>
